<compile_context>
chip_gen: v5e
topology: v5e:2x2
jax: 0.10.0
libtpu: 0.0.40
codegen_flags: <defaults>
</compile_context>

<pallas_src>
import functools

import jax
import jax.numpy as jnp
from jax.experimental import pallas as pl
from jax.experimental.pallas import tpu as pltpu


def _decoder_varb_kernel(sel_dim, negative_slope,
                         x_ref,                               # (T, Bp, D) f32
                         wih_f_ref, whh_f_ref, b_f_ref,       # (4,D,H) (4,H,H) (4,1,H)
                         wih_b_ref, whh_b_ref, b_b_ref,       # (4,D,H) (4,H,H) (4,1,H)
                         w1_ref, b1_ref,                      # (2,H,2H) (1,2H)
                         w2_ref, b2_ref,                      # (2H,Pp)  (1,Pp)
                         out_ref):                            # (Bp, Pp) f32
    T, Bp, D = x_ref.shape
    H = whh_f_ref.shape[1]
    cdt = wih_f_ref.dtype             # MXU operand dtype (f32 or bf16)

    n_f = sel_dim + 1                 # forward steps needed:  t = 0 .. sel_dim
    n_b = T - sel_dim                 # backward steps needed: t = T-1 .. sel_dim

    xv = x_ref[...]                                            # (T, Bp, D)

    def hoist_proj(x_slab, wih_r, b_r):
        """One lane-dense (n*Bp, D) @ (D, H) matmul per gate, bias folded in."""
        n = x_slab.shape[0]
        x2d = x_slab.reshape(n * Bp, D).astype(cdt)
        out = []
        for g in range(4):                                     # gate order: i, f, g, o
            p = jnp.dot(x2d, wih_r[g],
                        preferred_element_type=jnp.float32) + b_r[g]
            out.append(p.reshape(n, Bp, H))                    # f32
        return out

    xg_f = hoist_proj(xv[:n_f], wih_f_ref, b_f_ref)            # only t in [0, dim]
    xg_b = hoist_proj(xv[sel_dim:], wih_b_ref, b_b_ref)        # only t in [dim, T)

    # Hoist recurrent weight loads out of the loop.
    whh_f = [whh_f_ref[g] for g in range(4)]
    whh_b = [whh_b_ref[g] for g in range(4)]

    def step(xg, j, h, c, whh):
        hd = h.astype(cdt)
        i_g = jax.nn.sigmoid(xg[0][j] + jnp.dot(hd, whh[0], preferred_element_type=jnp.float32))
        f_g = jax.nn.sigmoid(xg[1][j] + jnp.dot(hd, whh[1], preferred_element_type=jnp.float32))
        g_g = jnp.tanh(      xg[2][j] + jnp.dot(hd, whh[2], preferred_element_type=jnp.float32))
        o_g = jax.nn.sigmoid(xg[3][j] + jnp.dot(hd, whh[3], preferred_element_type=jnp.float32))
        c_n = f_g * c + i_g * g_g
        h_n = o_g * jnp.tanh(c_n)
        return h_n, c_n

    zeros = jnp.zeros((Bp, H), jnp.float32)
    h_f, c_f = zeros, zeros
    h_b, c_b = zeros, zeros
    # Statically unrolled, interleaved recurrence: both directions advance in
    # the same iteration so their MXU / EUP / VALU work can overlap.
    for i in range(max(n_f, n_b)):
        if i < n_f:
            h_f, c_f = step(xg_f, i, h_f, c_f, whh_f)              # fwd time t = i
        if i < n_b:
            h_b, c_b = step(xg_b, n_b - 1 - i, h_b, c_b, whh_b)    # bwd time t = T-1-i
    # h_f / h_b now hold the bi-LSTM hidden state at time step `sel_dim`.

    # linear1 on concat([h_f, h_b]) without an explicit lane-dim concatenate.
    y = (jnp.dot(h_f.astype(cdt), w1_ref[0], preferred_element_type=jnp.float32)
         + jnp.dot(h_b.astype(cdt), w1_ref[1], preferred_element_type=jnp.float32)
         + b1_ref[...])                                            # (Bp, 2H)

    # dropout (eval) -> identity ; LeakyReLU
    y = jnp.where(y > 0, y, negative_slope * y)

    out = (jnp.dot(y.astype(cdt), w2_ref[...], preferred_element_type=jnp.float32)
           + b2_ref[...])                                          # (Bp, Pp)
    out_ref[...] = out.astype(out_ref.dtype)


def _split_lstm_params(wih, whh, b):
    """(D,4H),(H,4H),(1,4H) -> per-gate stacks (4,D,H),(4,H,H),(4,1,H)."""
    D, H4 = wih.shape
    H = H4 // 4
    wih_s = wih.reshape(D, 4, H).transpose(1, 0, 2)
    whh_s = whh.reshape(H, 4, H).transpose(1, 0, 2)
    b_s = b.reshape(4, H)[:, None, :]
    return wih_s, whh_s, b_s


def decoder_varb_forward(x, params, dim=0, negative_slope=0.01, use_bf16=False):
    """x: (batch, seq, in_dim) float32.  Returns (batch, pred_len) float32."""
    B, T, D = x.shape
    H = params["whh_f"].shape[0]
    HS = 2 * H
    P = params["w2"].shape[1]
    if not (0 <= dim < T):
        raise ValueError(f"dim={dim} out of range for sequence length {T}")

    Bp = ((B + 7) // 8) * 8            # sublane-pad batch (f32 sublane tile = 8)
    Pp = ((P + 127) // 128) * 128      # lane-pad pred_len -> lane-dense output store

    # time-major layout (time on the leading, untiled axis) + batch padding.
    x_tbd = jnp.transpose(x, (1, 0, 2)).astype(jnp.float32)
    if Bp != B:
        x_tbd = jnp.pad(x_tbd, ((0, 0), (0, Bp - B), (0, 0)))

    wih_f, whh_f, b_f = _split_lstm_params(params["wih_f"], params["whh_f"], params["b_f"])
    wih_b, whh_b, b_b = _split_lstm_params(params["wih_b"], params["whh_b"], params["b_b"])
    w1 = params["w1"].reshape(2, H, HS)                        # rows [:H] -> fwd, [H:] -> bwd
    b1 = params["b1"]
    w2 = jnp.pad(params["w2"], ((0, 0), (0, Pp - P)))          # (2H, Pp)
    b2 = jnp.pad(params["b2"], ((0, 0), (0, Pp - P)))          # (1, Pp)

    if use_bf16:                        # bf16 MXU operands, f32 accumulation/bias
        cast = lambda a: a.astype(jnp.bfloat16)
        wih_f, whh_f = cast(wih_f), cast(whh_f)
        wih_b, whh_b = cast(wih_b), cast(whh_b)
        w1, w2 = cast(w1), cast(w2)

    args = (x_tbd, wih_f, whh_f, b_f, wih_b, whh_b, b_b, w1, b1, w2, b2)

    # Explicit VMEM budget: inputs + output + hoisted per-gate projections, with margin.
    proj_bytes = 8 * (T + 1) * Bp * H * 4
    total = sum(a.size * a.dtype.itemsize for a in args) + Bp * Pp * 4 + proj_bytes
    vmem_limit = int(min(max(4 * total + (2 << 20), 32 << 20), 64 << 20))

    kernel = functools.partial(_decoder_varb_kernel, dim, negative_slope)
    vmem_spec = pl.BlockSpec(memory_space=pltpu.MemorySpace.VMEM)

    out = pl.pallas_call(
        kernel,
        out_shape=jax.ShapeDtypeStruct((Bp, Pp), jnp.float32),
        in_specs=[vmem_spec] * len(args),
        out_specs=vmem_spec,
        compiler_params=pltpu.CompilerParams(vmem_limit_bytes=vmem_limit),
    )(*args)
    return out[:B, :P]


def init_params(key, in_dim, pred_len):
    """Deterministic synthetic parameters matching Decoder_Varb shapes."""
    D = in_dim
    H = in_dim                    # per-direction LSTM hidden = hidden_size // 2
    HS = 2 * in_dim               # hidden_size
    keys = jax.random.split(key, 11)
    s_lstm = 1.0 / jnp.sqrt(H)
    s_l1 = 1.0 / jnp.sqrt(HS)
    return {
        "wih_f": jax.random.normal(keys[0], (D, 4 * H), jnp.float32) * s_lstm,
        "whh_f": jax.random.normal(keys[1], (H, 4 * H), jnp.float32) * s_lstm,
        "b_f":   jax.random.normal(keys[2], (1, 4 * H), jnp.float32) * s_lstm,
        "wih_b": jax.random.normal(keys[3], (D, 4 * H), jnp.float32) * s_lstm,
        "whh_b": jax.random.normal(keys[4], (H, 4 * H), jnp.float32) * s_lstm,
        "b_b":   jax.random.normal(keys[5], (1, 4 * H), jnp.float32) * s_lstm,
        "w1":    jax.random.normal(keys[6], (HS, HS), jnp.float32) * s_l1,
        "b1":    jax.random.normal(keys[7], (1, HS), jnp.float32) * s_l1,
        "w2":    jax.random.normal(keys[8], (HS, pred_len), jnp.float32) * s_l1,
        "b2":    jax.random.normal(keys[9], (1, pred_len), jnp.float32) * s_l1,
    }


def _reference_forward(x, p, dim=0, negative_slope=0.01):
    """Pure-JAX reference (same math) for correctness checks."""
    B, T, D = x.shape
    H = p["whh_f"].shape[0]

    def lstm(xs, wih, whh, b):
        def step(carry, xt):
            h, c = carry
            g = xt @ wih + h @ whh + b
            i = jax.nn.sigmoid(g[:, :H])
            f = jax.nn.sigmoid(g[:, H:2 * H])
            gg = jnp.tanh(g[:, 2 * H:3 * H])
            o = jax.nn.sigmoid(g[:, 3 * H:])
            c = f * c + i * gg
            h = o * jnp.tanh(c)
            return (h, c), h
        zeros = jnp.zeros((B, H), jnp.float32)
        _, hs = jax.lax.scan(step, (zeros, zeros), xs)
        return hs                                    # (T, B, H)

    x_t = jnp.transpose(x, (1, 0, 2))
    hf = lstm(x_t, p["wih_f"], p["whh_f"], p["b_f"])
    hb = lstm(x_t[::-1], p["wih_b"], p["whh_b"], p["b_b"])[::-1]
    z = jnp.concatenate([hf[dim], hb[dim]], axis=1)  # (B, 2H)
    y = z @ p["w1"] + p["b1"]
    y = jnp.where(y > 0, y, negative_slope * y)
    return y @ p["w2"] + p["b2"]


if __name__ == "__main__":
    B, T, in_dim, pred_len = 2, 8, 4, 6
    key = jax.random.PRNGKey(0)
    kx, kp = jax.random.split(key)
    x = jax.random.normal(kx, (B, T, in_dim), jnp.float32)
    params = init_params(kp, in_dim, pred_len)

    # f32 path, two different `dim` values (exercises trimmed + interleaved loops).
    for d in (0, 3):
        out = jax.block_until_ready(decoder_varb_forward(x, params, dim=d))
        ref = _reference_forward(x, params, dim=d)
        assert out.shape == (B, pred_len)
        assert jnp.allclose(out, ref, atol=1e-4, rtol=1e-4), f"f32 mismatch at dim={d}"

    # bf16 MXU-operand path (f32 accumulation): loose tolerance sanity check.
    out_bf16 = jax.block_until_ready(decoder_varb_forward(x, params, dim=0, use_bf16=True))
    ref0 = _reference_forward(x, params, dim=0)
    assert out_bf16.shape == (B, pred_len)
    assert float(jnp.max(jnp.abs(out_bf16 - ref0))) < 0.2, "bf16 path diverged"

    print("KERNEL_OK")
</pallas_src>

<mosaic_0001>
module attributes {stable_mosaic.version = 11 : i64} {
  func.func @_decoder_varb_kernel(%arg0: memref<8x8x4xf32, #tpu.memory_space<vmem>>, %arg1: memref<4x4x4xf32, #tpu.memory_space<vmem>>, %arg2: memref<4x4x4xf32, #tpu.memory_space<vmem>>, %arg3: memref<4x1x4xf32, #tpu.memory_space<vmem>>, %arg4: memref<4x4x4xf32, #tpu.memory_space<vmem>>, %arg5: memref<4x4x4xf32, #tpu.memory_space<vmem>>, %arg6: memref<4x1x4xf32, #tpu.memory_space<vmem>>, %arg7: memref<2x4x8xf32, #tpu.memory_space<vmem>>, %arg8: memref<1x8xf32, #tpu.memory_space<vmem>>, %arg9: memref<8x128xf32, #tpu.memory_space<vmem>>, %arg10: memref<1x128xf32, #tpu.memory_space<vmem>>, %arg11: memref<8x128xf32, #tpu.memory_space<vmem>>) attributes {dimension_semantics = [], scalar_prefetch = 0 : i64, scratch_operands = 0 : i64, tpu.core_type = #tpu.core_type<tc>} {
    %c0 = arith.constant 0 : index
    %c0_0 = arith.constant 0 : index
    %c0_1 = arith.constant 0 : index
    %0 = vector.load %arg0[%c0, %c0_0, %c0_1] : memref<8x8x4xf32, #tpu.memory_space<vmem>>, vector<8x8x4xf32>
    %1 = vector.extract_strided_slice %0 {offsets = [0, 0, 0], sizes = [1, 8, 4], strides = [1, 1, 1]} : vector<8x8x4xf32> to vector<1x8x4xf32>
    %2 = vector.shape_cast %1 : vector<1x8x4xf32> to vector<8x4xf32>
    %c0_2 = arith.constant 0 : index
    %c0_3 = arith.constant 0 : index
    %c0_4 = arith.constant 0 : index
    %3 = vector.load %arg1[%c0_2, %c0_3, %c0_4] : memref<4x4x4xf32, #tpu.memory_space<vmem>>, vector<1x4x4xf32>
    %4 = vector.shape_cast %3 : vector<1x4x4xf32> to vector<4x4xf32>
    %cst = arith.constant dense<0.000000e+00> : vector<8x4xf32>
    %5 = tpu.matmul %2, %4, %cst {dimension_numbers = #tpu.dot_dimension_numbers<[1], [0], [0], [1], [0, 0, 1, 1], [], []>} : vector<8x4xf32>, vector<4x4xf32>, vector<8x4xf32> -> vector<8x4xf32>
    %c0_5 = arith.constant 0 : index
    %c0_6 = arith.constant 0 : index
    %c0_7 = arith.constant 0 : index
    %6 = vector.load %arg3[%c0_5, %c0_6, %c0_7] : memref<4x1x4xf32, #tpu.memory_space<vmem>>, vector<1x1x4xf32>
    %7 = vector.shape_cast %6 : vector<1x1x4xf32> to vector<1x4xf32>
    %8 = vector.broadcast %7 : vector<1x4xf32> to vector<8x4xf32>
    %9 = arith.addf %5, %8 : vector<8x4xf32>
    %10 = vector.shape_cast %9 : vector<8x4xf32> to vector<1x8x4xf32>
    %c1 = arith.constant 1 : index
    %c0_8 = arith.constant 0 : index
    %c0_9 = arith.constant 0 : index
    %11 = vector.load %arg1[%c1, %c0_8, %c0_9] : memref<4x4x4xf32, #tpu.memory_space<vmem>>, vector<1x4x4xf32>
    %12 = vector.shape_cast %11 : vector<1x4x4xf32> to vector<4x4xf32>
    %cst_10 = arith.constant dense<0.000000e+00> : vector<8x4xf32>
    %13 = tpu.matmul %2, %12, %cst_10 {dimension_numbers = #tpu.dot_dimension_numbers<[1], [0], [0], [1], [0, 0, 1, 1], [], []>} : vector<8x4xf32>, vector<4x4xf32>, vector<8x4xf32> -> vector<8x4xf32>
    %c1_11 = arith.constant 1 : index
    %c0_12 = arith.constant 0 : index
    %c0_13 = arith.constant 0 : index
    %14 = vector.load %arg3[%c1_11, %c0_12, %c0_13] : memref<4x1x4xf32, #tpu.memory_space<vmem>>, vector<1x1x4xf32>
    %15 = vector.shape_cast %14 : vector<1x1x4xf32> to vector<1x4xf32>
    %16 = vector.broadcast %15 : vector<1x4xf32> to vector<8x4xf32>
    %17 = arith.addf %13, %16 : vector<8x4xf32>
    %18 = vector.shape_cast %17 : vector<8x4xf32> to vector<1x8x4xf32>
    %c2 = arith.constant 2 : index
    %c0_14 = arith.constant 0 : index
    %c0_15 = arith.constant 0 : index
    %19 = vector.load %arg1[%c2, %c0_14, %c0_15] : memref<4x4x4xf32, #tpu.memory_space<vmem>>, vector<1x4x4xf32>
    %20 = vector.shape_cast %19 : vector<1x4x4xf32> to vector<4x4xf32>
    %cst_16 = arith.constant dense<0.000000e+00> : vector<8x4xf32>
    %21 = tpu.matmul %2, %20, %cst_16 {dimension_numbers = #tpu.dot_dimension_numbers<[1], [0], [0], [1], [0, 0, 1, 1], [], []>} : vector<8x4xf32>, vector<4x4xf32>, vector<8x4xf32> -> vector<8x4xf32>
    %c2_17 = arith.constant 2 : index
    %c0_18 = arith.constant 0 : index
    %c0_19 = arith.constant 0 : index
    %22 = vector.load %arg3[%c2_17, %c0_18, %c0_19] : memref<4x1x4xf32, #tpu.memory_space<vmem>>, vector<1x1x4xf32>
    %23 = vector.shape_cast %22 : vector<1x1x4xf32> to vector<1x4xf32>
    %24 = vector.broadcast %23 : vector<1x4xf32> to vector<8x4xf32>
    %25 = arith.addf %21, %24 : vector<8x4xf32>
    %26 = vector.shape_cast %25 : vector<8x4xf32> to vector<1x8x4xf32>
    %c3 = arith.constant 3 : index
    %c0_20 = arith.constant 0 : index
    %c0_21 = arith.constant 0 : index
    %27 = vector.load %arg1[%c3, %c0_20, %c0_21] : memref<4x4x4xf32, #tpu.memory_space<vmem>>, vector<1x4x4xf32>
    %28 = vector.shape_cast %27 : vector<1x4x4xf32> to vector<4x4xf32>
    %cst_22 = arith.constant dense<0.000000e+00> : vector<8x4xf32>
    %29 = tpu.matmul %2, %28, %cst_22 {dimension_numbers = #tpu.dot_dimension_numbers<[1], [0], [0], [1], [0, 0, 1, 1], [], []>} : vector<8x4xf32>, vector<4x4xf32>, vector<8x4xf32> -> vector<8x4xf32>
    %c3_23 = arith.constant 3 : index
    %c0_24 = arith.constant 0 : index
    %c0_25 = arith.constant 0 : index
    %30 = vector.load %arg3[%c3_23, %c0_24, %c0_25] : memref<4x1x4xf32, #tpu.memory_space<vmem>>, vector<1x1x4xf32>
    %31 = vector.shape_cast %30 : vector<1x1x4xf32> to vector<1x4xf32>
    %32 = vector.broadcast %31 : vector<1x4xf32> to vector<8x4xf32>
    %33 = arith.addf %29, %32 : vector<8x4xf32>
    %34 = vector.shape_cast %33 : vector<8x4xf32> to vector<1x8x4xf32>
    %35 = vector.shape_cast %0 : vector<8x8x4xf32> to vector<64x4xf32>
    %c0_26 = arith.constant 0 : index
    %c0_27 = arith.constant 0 : index
    %c0_28 = arith.constant 0 : index
    %36 = vector.load %arg4[%c0_26, %c0_27, %c0_28] : memref<4x4x4xf32, #tpu.memory_space<vmem>>, vector<1x4x4xf32>
    %37 = vector.shape_cast %36 : vector<1x4x4xf32> to vector<4x4xf32>
    %cst_29 = arith.constant dense<0.000000e+00> : vector<64x4xf32>
    %38 = tpu.matmul %35, %37, %cst_29 {dimension_numbers = #tpu.dot_dimension_numbers<[1], [0], [0], [1], [0, 0, 1, 1], [], []>} : vector<64x4xf32>, vector<4x4xf32>, vector<64x4xf32> -> vector<64x4xf32>
    %c0_30 = arith.constant 0 : index
    %c0_31 = arith.constant 0 : index
    %c0_32 = arith.constant 0 : index
    %39 = vector.load %arg6[%c0_30, %c0_31, %c0_32] : memref<4x1x4xf32, #tpu.memory_space<vmem>>, vector<1x1x4xf32>
    %40 = vector.shape_cast %39 : vector<1x1x4xf32> to vector<1x4xf32>
    %41 = vector.broadcast %40 : vector<1x4xf32> to vector<64x4xf32>
    %42 = arith.addf %38, %41 : vector<64x4xf32>
    %43 = vector.shape_cast %42 : vector<64x4xf32> to vector<8x8x4xf32>
    %c1_33 = arith.constant 1 : index
    %c0_34 = arith.constant 0 : index
    %c0_35 = arith.constant 0 : index
    %44 = vector.load %arg4[%c1_33, %c0_34, %c0_35] : memref<4x4x4xf32, #tpu.memory_space<vmem>>, vector<1x4x4xf32>
    %45 = vector.shape_cast %44 : vector<1x4x4xf32> to vector<4x4xf32>
    %cst_36 = arith.constant dense<0.000000e+00> : vector<64x4xf32>
    %46 = tpu.matmul %35, %45, %cst_36 {dimension_numbers = #tpu.dot_dimension_numbers<[1], [0], [0], [1], [0, 0, 1, 1], [], []>} : vector<64x4xf32>, vector<4x4xf32>, vector<64x4xf32> -> vector<64x4xf32>
    %c1_37 = arith.constant 1 : index
    %c0_38 = arith.constant 0 : index
    %c0_39 = arith.constant 0 : index
    %47 = vector.load %arg6[%c1_37, %c0_38, %c0_39] : memref<4x1x4xf32, #tpu.memory_space<vmem>>, vector<1x1x4xf32>
    %48 = vector.shape_cast %47 : vector<1x1x4xf32> to vector<1x4xf32>
    %49 = vector.broadcast %48 : vector<1x4xf32> to vector<64x4xf32>
    %50 = arith.addf %46, %49 : vector<64x4xf32>
    %51 = vector.shape_cast %50 : vector<64x4xf32> to vector<8x8x4xf32>
    %c2_40 = arith.constant 2 : index
    %c0_41 = arith.constant 0 : index
    %c0_42 = arith.constant 0 : index
    %52 = vector.load %arg4[%c2_40, %c0_41, %c0_42] : memref<4x4x4xf32, #tpu.memory_space<vmem>>, vector<1x4x4xf32>
    %53 = vector.shape_cast %52 : vector<1x4x4xf32> to vector<4x4xf32>
    %cst_43 = arith.constant dense<0.000000e+00> : vector<64x4xf32>
    %54 = tpu.matmul %35, %53, %cst_43 {dimension_numbers = #tpu.dot_dimension_numbers<[1], [0], [0], [1], [0, 0, 1, 1], [], []>} : vector<64x4xf32>, vector<4x4xf32>, vector<64x4xf32> -> vector<64x4xf32>
    %c2_44 = arith.constant 2 : index
    %c0_45 = arith.constant 0 : index
    %c0_46 = arith.constant 0 : index
    %55 = vector.load %arg6[%c2_44, %c0_45, %c0_46] : memref<4x1x4xf32, #tpu.memory_space<vmem>>, vector<1x1x4xf32>
    %56 = vector.shape_cast %55 : vector<1x1x4xf32> to vector<1x4xf32>
    %57 = vector.broadcast %56 : vector<1x4xf32> to vector<64x4xf32>
    %58 = arith.addf %54, %57 : vector<64x4xf32>
    %59 = vector.shape_cast %58 : vector<64x4xf32> to vector<8x8x4xf32>
    %c3_47 = arith.constant 3 : index
    %c0_48 = arith.constant 0 : index
    %c0_49 = arith.constant 0 : index
    %60 = vector.load %arg4[%c3_47, %c0_48, %c0_49] : memref<4x4x4xf32, #tpu.memory_space<vmem>>, vector<1x4x4xf32>
    %61 = vector.shape_cast %60 : vector<1x4x4xf32> to vector<4x4xf32>
    %cst_50 = arith.constant dense<0.000000e+00> : vector<64x4xf32>
    %62 = tpu.matmul %35, %61, %cst_50 {dimension_numbers = #tpu.dot_dimension_numbers<[1], [0], [0], [1], [0, 0, 1, 1], [], []>} : vector<64x4xf32>, vector<4x4xf32>, vector<64x4xf32> -> vector<64x4xf32>
    %c3_51 = arith.constant 3 : index
    %c0_52 = arith.constant 0 : index
    %c0_53 = arith.constant 0 : index
    %63 = vector.load %arg6[%c3_51, %c0_52, %c0_53] : memref<4x1x4xf32, #tpu.memory_space<vmem>>, vector<1x1x4xf32>
    %64 = vector.shape_cast %63 : vector<1x1x4xf32> to vector<1x4xf32>
    %65 = vector.broadcast %64 : vector<1x4xf32> to vector<64x4xf32>
    %66 = arith.addf %62, %65 : vector<64x4xf32>
    %67 = vector.shape_cast %66 : vector<64x4xf32> to vector<8x8x4xf32>
    %c0_54 = arith.constant 0 : index
    %c0_55 = arith.constant 0 : index
    %c0_56 = arith.constant 0 : index
    %68 = vector.load %arg2[%c0_54, %c0_55, %c0_56] : memref<4x4x4xf32, #tpu.memory_space<vmem>>, vector<1x4x4xf32>
    %69 = vector.shape_cast %68 : vector<1x4x4xf32> to vector<4x4xf32>
    %c1_57 = arith.constant 1 : index
    %c0_58 = arith.constant 0 : index
    %c0_59 = arith.constant 0 : index
    %70 = vector.load %arg2[%c1_57, %c0_58, %c0_59] : memref<4x4x4xf32, #tpu.memory_space<vmem>>, vector<1x4x4xf32>
    %71 = vector.shape_cast %70 : vector<1x4x4xf32> to vector<4x4xf32>
    %c2_60 = arith.constant 2 : index
    %c0_61 = arith.constant 0 : index
    %c0_62 = arith.constant 0 : index
    %72 = vector.load %arg2[%c2_60, %c0_61, %c0_62] : memref<4x4x4xf32, #tpu.memory_space<vmem>>, vector<1x4x4xf32>
    %73 = vector.shape_cast %72 : vector<1x4x4xf32> to vector<4x4xf32>
    %c3_63 = arith.constant 3 : index
    %c0_64 = arith.constant 0 : index
    %c0_65 = arith.constant 0 : index
    %74 = vector.load %arg2[%c3_63, %c0_64, %c0_65] : memref<4x4x4xf32, #tpu.memory_space<vmem>>, vector<1x4x4xf32>
    %75 = vector.shape_cast %74 : vector<1x4x4xf32> to vector<4x4xf32>
    %c0_66 = arith.constant 0 : index
    %c0_67 = arith.constant 0 : index
    %c0_68 = arith.constant 0 : index
    %76 = vector.load %arg5[%c0_66, %c0_67, %c0_68] : memref<4x4x4xf32, #tpu.memory_space<vmem>>, vector<1x4x4xf32>
    %77 = vector.shape_cast %76 : vector<1x4x4xf32> to vector<4x4xf32>
    %c1_69 = arith.constant 1 : index
    %c0_70 = arith.constant 0 : index
    %c0_71 = arith.constant 0 : index
    %78 = vector.load %arg5[%c1_69, %c0_70, %c0_71] : memref<4x4x4xf32, #tpu.memory_space<vmem>>, vector<1x4x4xf32>
    %79 = vector.shape_cast %78 : vector<1x4x4xf32> to vector<4x4xf32>
    %c2_72 = arith.constant 2 : index
    %c0_73 = arith.constant 0 : index
    %c0_74 = arith.constant 0 : index
    %80 = vector.load %arg5[%c2_72, %c0_73, %c0_74] : memref<4x4x4xf32, #tpu.memory_space<vmem>>, vector<1x4x4xf32>
    %81 = vector.shape_cast %80 : vector<1x4x4xf32> to vector<4x4xf32>
    %c3_75 = arith.constant 3 : index
    %c0_76 = arith.constant 0 : index
    %c0_77 = arith.constant 0 : index
    %82 = vector.load %arg5[%c3_75, %c0_76, %c0_77] : memref<4x4x4xf32, #tpu.memory_space<vmem>>, vector<1x4x4xf32>
    %83 = vector.shape_cast %82 : vector<1x4x4xf32> to vector<4x4xf32>
    %cst_78 = arith.constant 0.000000e+00 : f32
    %84 = vector.broadcast %cst_78 : f32 to vector<8x4xf32>
    %85 = vector.shape_cast %10 : vector<1x8x4xf32> to vector<8x4xf32>
    %cst_79 = arith.constant dense<0.000000e+00> : vector<8x4xf32>
    %86 = tpu.matmul %84, %69, %cst_79 {dimension_numbers = #tpu.dot_dimension_numbers<[1], [0], [0], [1], [0, 0, 1, 1], [], []>} : vector<8x4xf32>, vector<4x4xf32>, vector<8x4xf32> -> vector<8x4xf32>
    %87 = arith.addf %85, %86 : vector<8x4xf32>
    %88 = arith.negf %87 : vector<8x4xf32>
    %89 = math.exp %88 : vector<8x4xf32>
    %cst_80 = arith.constant 1.000000e+00 : f32
    %90 = vector.broadcast %cst_80 : f32 to vector<8x4xf32>
    %91 = arith.addf %90, %89 : vector<8x4xf32>
    %92 = arith.divf %90, %91 : vector<8x4xf32>
    %93 = vector.shape_cast %18 : vector<1x8x4xf32> to vector<8x4xf32>
    %cst_81 = arith.constant dense<0.000000e+00> : vector<8x4xf32>
    %94 = tpu.matmul %84, %71, %cst_81 {dimension_numbers = #tpu.dot_dimension_numbers<[1], [0], [0], [1], [0, 0, 1, 1], [], []>} : vector<8x4xf32>, vector<4x4xf32>, vector<8x4xf32> -> vector<8x4xf32>
    %95 = arith.addf %93, %94 : vector<8x4xf32>
    %96 = arith.negf %95 : vector<8x4xf32>
    %97 = math.exp %96 : vector<8x4xf32>
    %cst_82 = arith.constant 1.000000e+00 : f32
    %98 = vector.broadcast %cst_82 : f32 to vector<8x4xf32>
    %99 = arith.addf %98, %97 : vector<8x4xf32>
    %100 = arith.divf %98, %99 : vector<8x4xf32>
    %101 = vector.shape_cast %26 : vector<1x8x4xf32> to vector<8x4xf32>
    %cst_83 = arith.constant dense<0.000000e+00> : vector<8x4xf32>
    %102 = tpu.matmul %84, %73, %cst_83 {dimension_numbers = #tpu.dot_dimension_numbers<[1], [0], [0], [1], [0, 0, 1, 1], [], []>} : vector<8x4xf32>, vector<4x4xf32>, vector<8x4xf32> -> vector<8x4xf32>
    %103 = arith.addf %101, %102 : vector<8x4xf32>
    %104 = math.tanh %103 : vector<8x4xf32>
    %105 = vector.shape_cast %34 : vector<1x8x4xf32> to vector<8x4xf32>
    %cst_84 = arith.constant dense<0.000000e+00> : vector<8x4xf32>
    %106 = tpu.matmul %84, %75, %cst_84 {dimension_numbers = #tpu.dot_dimension_numbers<[1], [0], [0], [1], [0, 0, 1, 1], [], []>} : vector<8x4xf32>, vector<4x4xf32>, vector<8x4xf32> -> vector<8x4xf32>
    %107 = arith.addf %105, %106 : vector<8x4xf32>
    %108 = arith.negf %107 : vector<8x4xf32>
    %109 = math.exp %108 : vector<8x4xf32>
    %cst_85 = arith.constant 1.000000e+00 : f32
    %110 = vector.broadcast %cst_85 : f32 to vector<8x4xf32>
    %111 = arith.addf %110, %109 : vector<8x4xf32>
    %112 = arith.divf %110, %111 : vector<8x4xf32>
    %113 = arith.mulf %100, %84 : vector<8x4xf32>
    %114 = arith.mulf %92, %104 : vector<8x4xf32>
    %115 = arith.addf %113, %114 : vector<8x4xf32>
    %116 = math.tanh %115 : vector<8x4xf32>
    %117 = arith.mulf %112, %116 : vector<8x4xf32>
    %118 = vector.extract_strided_slice %43 {offsets = [7, 0, 0], sizes = [1, 8, 4], strides = [1, 1, 1]} : vector<8x8x4xf32> to vector<1x8x4xf32>
    %119 = vector.shape_cast %118 : vector<1x8x4xf32> to vector<8x4xf32>
    %cst_86 = arith.constant dense<0.000000e+00> : vector<8x4xf32>
    %120 = tpu.matmul %84, %77, %cst_86 {dimension_numbers = #tpu.dot_dimension_numbers<[1], [0], [0], [1], [0, 0, 1, 1], [], []>} : vector<8x4xf32>, vector<4x4xf32>, vector<8x4xf32> -> vector<8x4xf32>
    %121 = arith.addf %119, %120 : vector<8x4xf32>
    %122 = arith.negf %121 : vector<8x4xf32>
    %123 = math.exp %122 : vector<8x4xf32>
    %cst_87 = arith.constant 1.000000e+00 : f32
    %124 = vector.broadcast %cst_87 : f32 to vector<8x4xf32>
    %125 = arith.addf %124, %123 : vector<8x4xf32>
    %126 = arith.divf %124, %125 : vector<8x4xf32>
    %127 = vector.extract_strided_slice %51 {offsets = [7, 0, 0], sizes = [1, 8, 4], strides = [1, 1, 1]} : vector<8x8x4xf32> to vector<1x8x4xf32>
    %128 = vector.shape_cast %127 : vector<1x8x4xf32> to vector<8x4xf32>
    %cst_88 = arith.constant dense<0.000000e+00> : vector<8x4xf32>
    %129 = tpu.matmul %84, %79, %cst_88 {dimension_numbers = #tpu.dot_dimension_numbers<[1], [0], [0], [1], [0, 0, 1, 1], [], []>} : vector<8x4xf32>, vector<4x4xf32>, vector<8x4xf32> -> vector<8x4xf32>
    %130 = arith.addf %128, %129 : vector<8x4xf32>
    %131 = arith.negf %130 : vector<8x4xf32>
    %132 = math.exp %131 : vector<8x4xf32>
    %cst_89 = arith.constant 1.000000e+00 : f32
    %133 = vector.broadcast %cst_89 : f32 to vector<8x4xf32>
    %134 = arith.addf %133, %132 : vector<8x4xf32>
    %135 = arith.divf %133, %134 : vector<8x4xf32>
    %136 = vector.extract_strided_slice %59 {offsets = [7, 0, 0], sizes = [1, 8, 4], strides = [1, 1, 1]} : vector<8x8x4xf32> to vector<1x8x4xf32>
    %137 = vector.shape_cast %136 : vector<1x8x4xf32> to vector<8x4xf32>
    %cst_90 = arith.constant dense<0.000000e+00> : vector<8x4xf32>
    %138 = tpu.matmul %84, %81, %cst_90 {dimension_numbers = #tpu.dot_dimension_numbers<[1], [0], [0], [1], [0, 0, 1, 1], [], []>} : vector<8x4xf32>, vector<4x4xf32>, vector<8x4xf32> -> vector<8x4xf32>
    %139 = arith.addf %137, %138 : vector<8x4xf32>
    %140 = math.tanh %139 : vector<8x4xf32>
    %141 = vector.extract_strided_slice %67 {offsets = [7, 0, 0], sizes = [1, 8, 4], strides = [1, 1, 1]} : vector<8x8x4xf32> to vector<1x8x4xf32>
    %142 = vector.shape_cast %141 : vector<1x8x4xf32> to vector<8x4xf32>
    %cst_91 = arith.constant dense<0.000000e+00> : vector<8x4xf32>
    %143 = tpu.matmul %84, %83, %cst_91 {dimension_numbers = #tpu.dot_dimension_numbers<[1], [0], [0], [1], [0, 0, 1, 1], [], []>} : vector<8x4xf32>, vector<4x4xf32>, vector<8x4xf32> -> vector<8x4xf32>
    %144 = arith.addf %142, %143 : vector<8x4xf32>
    %145 = arith.negf %144 : vector<8x4xf32>
    %146 = math.exp %145 : vector<8x4xf32>
    %cst_92 = arith.constant 1.000000e+00 : f32
    %147 = vector.broadcast %cst_92 : f32 to vector<8x4xf32>
    %148 = arith.addf %147, %146 : vector<8x4xf32>
    %149 = arith.divf %147, %148 : vector<8x4xf32>
    %150 = arith.mulf %135, %84 : vector<8x4xf32>
    %151 = arith.mulf %126, %140 : vector<8x4xf32>
    %152 = arith.addf %150, %151 : vector<8x4xf32>
    %153 = math.tanh %152 : vector<8x4xf32>
    %154 = arith.mulf %149, %153 : vector<8x4xf32>
    %155 = vector.extract_strided_slice %43 {offsets = [6, 0, 0], sizes = [1, 8, 4], strides = [1, 1, 1]} : vector<8x8x4xf32> to vector<1x8x4xf32>
    %156 = vector.shape_cast %155 : vector<1x8x4xf32> to vector<8x4xf32>
    %cst_93 = arith.constant dense<0.000000e+00> : vector<8x4xf32>
    %157 = tpu.matmul %154, %77, %cst_93 {dimension_numbers = #tpu.dot_dimension_numbers<[1], [0], [0], [1], [0, 0, 1, 1], [], []>} : vector<8x4xf32>, vector<4x4xf32>, vector<8x4xf32> -> vector<8x4xf32>
    %158 = arith.addf %156, %157 : vector<8x4xf32>
    %159 = arith.negf %158 : vector<8x4xf32>
    %160 = math.exp %159 : vector<8x4xf32>
    %cst_94 = arith.constant 1.000000e+00 : f32
    %161 = vector.broadcast %cst_94 : f32 to vector<8x4xf32>
    %162 = arith.addf %161, %160 : vector<8x4xf32>
    %163 = arith.divf %161, %162 : vector<8x4xf32>
    %164 = vector.extract_strided_slice %51 {offsets = [6, 0, 0], sizes = [1, 8, 4], strides = [1, 1, 1]} : vector<8x8x4xf32> to vector<1x8x4xf32>
    %165 = vector.shape_cast %164 : vector<1x8x4xf32> to vector<8x4xf32>
    %cst_95 = arith.constant dense<0.000000e+00> : vector<8x4xf32>
    %166 = tpu.matmul %154, %79, %cst_95 {dimension_numbers = #tpu.dot_dimension_numbers<[1], [0], [0], [1], [0, 0, 1, 1], [], []>} : vector<8x4xf32>, vector<4x4xf32>, vector<8x4xf32> -> vector<8x4xf32>
    %167 = arith.addf %165, %166 : vector<8x4xf32>
    %168 = arith.negf %167 : vector<8x4xf32>
    %169 = math.exp %168 : vector<8x4xf32>
    %cst_96 = arith.constant 1.000000e+00 : f32
    %170 = vector.broadcast %cst_96 : f32 to vector<8x4xf32>
    %171 = arith.addf %170, %169 : vector<8x4xf32>
    %172 = arith.divf %170, %171 : vector<8x4xf32>
    %173 = vector.extract_strided_slice %59 {offsets = [6, 0, 0], sizes = [1, 8, 4], strides = [1, 1, 1]} : vector<8x8x4xf32> to vector<1x8x4xf32>
    %174 = vector.shape_cast %173 : vector<1x8x4xf32> to vector<8x4xf32>
    %cst_97 = arith.constant dense<0.000000e+00> : vector<8x4xf32>
    %175 = tpu.matmul %154, %81, %cst_97 {dimension_numbers = #tpu.dot_dimension_numbers<[1], [0], [0], [1], [0, 0, 1, 1], [], []>} : vector<8x4xf32>, vector<4x4xf32>, vector<8x4xf32> -> vector<8x4xf32>
    %176 = arith.addf %174, %175 : vector<8x4xf32>
    %177 = math.tanh %176 : vector<8x4xf32>
    %178 = vector.extract_strided_slice %67 {offsets = [6, 0, 0], sizes = [1, 8, 4], strides = [1, 1, 1]} : vector<8x8x4xf32> to vector<1x8x4xf32>
    %179 = vector.shape_cast %178 : vector<1x8x4xf32> to vector<8x4xf32>
    %cst_98 = arith.constant dense<0.000000e+00> : vector<8x4xf32>
    %180 = tpu.matmul %154, %83, %cst_98 {dimension_numbers = #tpu.dot_dimension_numbers<[1], [0], [0], [1], [0, 0, 1, 1], [], []>} : vector<8x4xf32>, vector<4x4xf32>, vector<8x4xf32> -> vector<8x4xf32>
    %181 = arith.addf %179, %180 : vector<8x4xf32>
    %182 = arith.negf %181 : vector<8x4xf32>
    %183 = math.exp %182 : vector<8x4xf32>
    %cst_99 = arith.constant 1.000000e+00 : f32
    %184 = vector.broadcast %cst_99 : f32 to vector<8x4xf32>
    %185 = arith.addf %184, %183 : vector<8x4xf32>
    %186 = arith.divf %184, %185 : vector<8x4xf32>
    %187 = arith.mulf %172, %152 : vector<8x4xf32>
    %188 = arith.mulf %163, %177 : vector<8x4xf32>
    %189 = arith.addf %187, %188 : vector<8x4xf32>
    %190 = math.tanh %189 : vector<8x4xf32>
    %191 = arith.mulf %186, %190 : vector<8x4xf32>
    %192 = vector.extract_strided_slice %43 {offsets = [5, 0, 0], sizes = [1, 8, 4], strides = [1, 1, 1]} : vector<8x8x4xf32> to vector<1x8x4xf32>
    %193 = vector.shape_cast %192 : vector<1x8x4xf32> to vector<8x4xf32>
    %cst_100 = arith.constant dense<0.000000e+00> : vector<8x4xf32>
    %194 = tpu.matmul %191, %77, %cst_100 {dimension_numbers = #tpu.dot_dimension_numbers<[1], [0], [0], [1], [0, 0, 1, 1], [], []>} : vector<8x4xf32>, vector<4x4xf32>, vector<8x4xf32> -> vector<8x4xf32>
    %195 = arith.addf %193, %194 : vector<8x4xf32>
    %196 = arith.negf %195 : vector<8x4xf32>
    %197 = math.exp %196 : vector<8x4xf32>
    %cst_101 = arith.constant 1.000000e+00 : f32
    %198 = vector.broadcast %cst_101 : f32 to vector<8x4xf32>
    %199 = arith.addf %198, %197 : vector<8x4xf32>
    %200 = arith.divf %198, %199 : vector<8x4xf32>
    %201 = vector.extract_strided_slice %51 {offsets = [5, 0, 0], sizes = [1, 8, 4], strides = [1, 1, 1]} : vector<8x8x4xf32> to vector<1x8x4xf32>
    %202 = vector.shape_cast %201 : vector<1x8x4xf32> to vector<8x4xf32>
    %cst_102 = arith.constant dense<0.000000e+00> : vector<8x4xf32>
    %203 = tpu.matmul %191, %79, %cst_102 {dimension_numbers = #tpu.dot_dimension_numbers<[1], [0], [0], [1], [0, 0, 1, 1], [], []>} : vector<8x4xf32>, vector<4x4xf32>, vector<8x4xf32> -> vector<8x4xf32>
    %204 = arith.addf %202, %203 : vector<8x4xf32>
    %205 = arith.negf %204 : vector<8x4xf32>
    %206 = math.exp %205 : vector<8x4xf32>
    %cst_103 = arith.constant 1.000000e+00 : f32
    %207 = vector.broadcast %cst_103 : f32 to vector<8x4xf32>
    %208 = arith.addf %207, %206 : vector<8x4xf32>
    %209 = arith.divf %207, %208 : vector<8x4xf32>
    %210 = vector.extract_strided_slice %59 {offsets = [5, 0, 0], sizes = [1, 8, 4], strides = [1, 1, 1]} : vector<8x8x4xf32> to vector<1x8x4xf32>
    %211 = vector.shape_cast %210 : vector<1x8x4xf32> to vector<8x4xf32>
    %cst_104 = arith.constant dense<0.000000e+00> : vector<8x4xf32>
    %212 = tpu.matmul %191, %81, %cst_104 {dimension_numbers = #tpu.dot_dimension_numbers<[1], [0], [0], [1], [0, 0, 1, 1], [], []>} : vector<8x4xf32>, vector<4x4xf32>, vector<8x4xf32> -> vector<8x4xf32>
    %213 = arith.addf %211, %212 : vector<8x4xf32>
    %214 = math.tanh %213 : vector<8x4xf32>
    %215 = vector.extract_strided_slice %67 {offsets = [5, 0, 0], sizes = [1, 8, 4], strides = [1, 1, 1]} : vector<8x8x4xf32> to vector<1x8x4xf32>
    %216 = vector.shape_cast %215 : vector<1x8x4xf32> to vector<8x4xf32>
    %cst_105 = arith.constant dense<0.000000e+00> : vector<8x4xf32>
    %217 = tpu.matmul %191, %83, %cst_105 {dimension_numbers = #tpu.dot_dimension_numbers<[1], [0], [0], [1], [0, 0, 1, 1], [], []>} : vector<8x4xf32>, vector<4x4xf32>, vector<8x4xf32> -> vector<8x4xf32>
    %218 = arith.addf %216, %217 : vector<8x4xf32>
    %219 = arith.negf %218 : vector<8x4xf32>
    %220 = math.exp %219 : vector<8x4xf32>
    %cst_106 = arith.constant 1.000000e+00 : f32
    %221 = vector.broadcast %cst_106 : f32 to vector<8x4xf32>
    %222 = arith.addf %221, %220 : vector<8x4xf32>
    %223 = arith.divf %221, %222 : vector<8x4xf32>
    %224 = arith.mulf %209, %189 : vector<8x4xf32>
    %225 = arith.mulf %200, %214 : vector<8x4xf32>
    %226 = arith.addf %224, %225 : vector<8x4xf32>
    %227 = math.tanh %226 : vector<8x4xf32>
    %228 = arith.mulf %223, %227 : vector<8x4xf32>
    %229 = vector.extract_strided_slice %43 {offsets = [4, 0, 0], sizes = [1, 8, 4], strides = [1, 1, 1]} : vector<8x8x4xf32> to vector<1x8x4xf32>
    %230 = vector.shape_cast %229 : vector<1x8x4xf32> to vector<8x4xf32>
    %cst_107 = arith.constant dense<0.000000e+00> : vector<8x4xf32>
    %231 = tpu.matmul %228, %77, %cst_107 {dimension_numbers = #tpu.dot_dimension_numbers<[1], [0], [0], [1], [0, 0, 1, 1], [], []>} : vector<8x4xf32>, vector<4x4xf32>, vector<8x4xf32> -> vector<8x4xf32>
    %232 = arith.addf %230, %231 : vector<8x4xf32>
    %233 = arith.negf %232 : vector<8x4xf32>
    %234 = math.exp %233 : vector<8x4xf32>
    %cst_108 = arith.constant 1.000000e+00 : f32
    %235 = vector.broadcast %cst_108 : f32 to vector<8x4xf32>
    %236 = arith.addf %235, %234 : vector<8x4xf32>
    %237 = arith.divf %235, %236 : vector<8x4xf32>
    %238 = vector.extract_strided_slice %51 {offsets = [4, 0, 0], sizes = [1, 8, 4], strides = [1, 1, 1]} : vector<8x8x4xf32> to vector<1x8x4xf32>
    %239 = vector.shape_cast %238 : vector<1x8x4xf32> to vector<8x4xf32>
    %cst_109 = arith.constant dense<0.000000e+00> : vector<8x4xf32>
    %240 = tpu.matmul %228, %79, %cst_109 {dimension_numbers = #tpu.dot_dimension_numbers<[1], [0], [0], [1], [0, 0, 1, 1], [], []>} : vector<8x4xf32>, vector<4x4xf32>, vector<8x4xf32> -> vector<8x4xf32>
    %241 = arith.addf %239, %240 : vector<8x4xf32>
    %242 = arith.negf %241 : vector<8x4xf32>
    %243 = math.exp %242 : vector<8x4xf32>
    %cst_110 = arith.constant 1.000000e+00 : f32
    %244 = vector.broadcast %cst_110 : f32 to vector<8x4xf32>
    %245 = arith.addf %244, %243 : vector<8x4xf32>
    %246 = arith.divf %244, %245 : vector<8x4xf32>
    %247 = vector.extract_strided_slice %59 {offsets = [4, 0, 0], sizes = [1, 8, 4], strides = [1, 1, 1]} : vector<8x8x4xf32> to vector<1x8x4xf32>
    %248 = vector.shape_cast %247 : vector<1x8x4xf32> to vector<8x4xf32>
    %cst_111 = arith.constant dense<0.000000e+00> : vector<8x4xf32>
    %249 = tpu.matmul %228, %81, %cst_111 {dimension_numbers = #tpu.dot_dimension_numbers<[1], [0], [0], [1], [0, 0, 1, 1], [], []>} : vector<8x4xf32>, vector<4x4xf32>, vector<8x4xf32> -> vector<8x4xf32>
    %250 = arith.addf %248, %249 : vector<8x4xf32>
    %251 = math.tanh %250 : vector<8x4xf32>
    %252 = vector.extract_strided_slice %67 {offsets = [4, 0, 0], sizes = [1, 8, 4], strides = [1, 1, 1]} : vector<8x8x4xf32> to vector<1x8x4xf32>
    %253 = vector.shape_cast %252 : vector<1x8x4xf32> to vector<8x4xf32>
    %cst_112 = arith.constant dense<0.000000e+00> : vector<8x4xf32>
    %254 = tpu.matmul %228, %83, %cst_112 {dimension_numbers = #tpu.dot_dimension_numbers<[1], [0], [0], [1], [0, 0, 1, 1], [], []>} : vector<8x4xf32>, vector<4x4xf32>, vector<8x4xf32> -> vector<8x4xf32>
    %255 = arith.addf %253, %254 : vector<8x4xf32>
    %256 = arith.negf %255 : vector<8x4xf32>
    %257 = math.exp %256 : vector<8x4xf32>
    %cst_113 = arith.constant 1.000000e+00 : f32
    %258 = vector.broadcast %cst_113 : f32 to vector<8x4xf32>
    %259 = arith.addf %258, %257 : vector<8x4xf32>
    %260 = arith.divf %258, %259 : vector<8x4xf32>
    %261 = arith.mulf %246, %226 : vector<8x4xf32>
    %262 = arith.mulf %237, %251 : vector<8x4xf32>
    %263 = arith.addf %261, %262 : vector<8x4xf32>
    %264 = math.tanh %263 : vector<8x4xf32>
    %265 = arith.mulf %260, %264 : vector<8x4xf32>
    %266 = vector.extract_strided_slice %43 {offsets = [3, 0, 0], sizes = [1, 8, 4], strides = [1, 1, 1]} : vector<8x8x4xf32> to vector<1x8x4xf32>
    %267 = vector.shape_cast %266 : vector<1x8x4xf32> to vector<8x4xf32>
    %cst_114 = arith.constant dense<0.000000e+00> : vector<8x4xf32>
    %268 = tpu.matmul %265, %77, %cst_114 {dimension_numbers = #tpu.dot_dimension_numbers<[1], [0], [0], [1], [0, 0, 1, 1], [], []>} : vector<8x4xf32>, vector<4x4xf32>, vector<8x4xf32> -> vector<8x4xf32>
    %269 = arith.addf %267, %268 : vector<8x4xf32>
    %270 = arith.negf %269 : vector<8x4xf32>
    %271 = math.exp %270 : vector<8x4xf32>
    %cst_115 = arith.constant 1.000000e+00 : f32
    %272 = vector.broadcast %cst_115 : f32 to vector<8x4xf32>
    %273 = arith.addf %272, %271 : vector<8x4xf32>
    %274 = arith.divf %272, %273 : vector<8x4xf32>
    %275 = vector.extract_strided_slice %51 {offsets = [3, 0, 0], sizes = [1, 8, 4], strides = [1, 1, 1]} : vector<8x8x4xf32> to vector<1x8x4xf32>
    %276 = vector.shape_cast %275 : vector<1x8x4xf32> to vector<8x4xf32>
    %cst_116 = arith.constant dense<0.000000e+00> : vector<8x4xf32>
    %277 = tpu.matmul %265, %79, %cst_116 {dimension_numbers = #tpu.dot_dimension_numbers<[1], [0], [0], [1], [0, 0, 1, 1], [], []>} : vector<8x4xf32>, vector<4x4xf32>, vector<8x4xf32> -> vector<8x4xf32>
    %278 = arith.addf %276, %277 : vector<8x4xf32>
    %279 = arith.negf %278 : vector<8x4xf32>
    %280 = math.exp %279 : vector<8x4xf32>
    %cst_117 = arith.constant 1.000000e+00 : f32
    %281 = vector.broadcast %cst_117 : f32 to vector<8x4xf32>
    %282 = arith.addf %281, %280 : vector<8x4xf32>
    %283 = arith.divf %281, %282 : vector<8x4xf32>
    %284 = vector.extract_strided_slice %59 {offsets = [3, 0, 0], sizes = [1, 8, 4], strides = [1, 1, 1]} : vector<8x8x4xf32> to vector<1x8x4xf32>
    %285 = vector.shape_cast %284 : vector<1x8x4xf32> to vector<8x4xf32>
    %cst_118 = arith.constant dense<0.000000e+00> : vector<8x4xf32>
    %286 = tpu.matmul %265, %81, %cst_118 {dimension_numbers = #tpu.dot_dimension_numbers<[1], [0], [0], [1], [0, 0, 1, 1], [], []>} : vector<8x4xf32>, vector<4x4xf32>, vector<8x4xf32> -> vector<8x4xf32>
    %287 = arith.addf %285, %286 : vector<8x4xf32>
    %288 = math.tanh %287 : vector<8x4xf32>
    %289 = vector.extract_strided_slice %67 {offsets = [3, 0, 0], sizes = [1, 8, 4], strides = [1, 1, 1]} : vector<8x8x4xf32> to vector<1x8x4xf32>
    %290 = vector.shape_cast %289 : vector<1x8x4xf32> to vector<8x4xf32>
    %cst_119 = arith.constant dense<0.000000e+00> : vector<8x4xf32>
    %291 = tpu.matmul %265, %83, %cst_119 {dimension_numbers = #tpu.dot_dimension_numbers<[1], [0], [0], [1], [0, 0, 1, 1], [], []>} : vector<8x4xf32>, vector<4x4xf32>, vector<8x4xf32> -> vector<8x4xf32>
    %292 = arith.addf %290, %291 : vector<8x4xf32>
    %293 = arith.negf %292 : vector<8x4xf32>
    %294 = math.exp %293 : vector<8x4xf32>
    %cst_120 = arith.constant 1.000000e+00 : f32
    %295 = vector.broadcast %cst_120 : f32 to vector<8x4xf32>
    %296 = arith.addf %295, %294 : vector<8x4xf32>
    %297 = arith.divf %295, %296 : vector<8x4xf32>
    %298 = arith.mulf %283, %263 : vector<8x4xf32>
    %299 = arith.mulf %274, %288 : vector<8x4xf32>
    %300 = arith.addf %298, %299 : vector<8x4xf32>
    %301 = math.tanh %300 : vector<8x4xf32>
    %302 = arith.mulf %297, %301 : vector<8x4xf32>
    %303 = vector.extract_strided_slice %43 {offsets = [2, 0, 0], sizes = [1, 8, 4], strides = [1, 1, 1]} : vector<8x8x4xf32> to vector<1x8x4xf32>
    %304 = vector.shape_cast %303 : vector<1x8x4xf32> to vector<8x4xf32>
    %cst_121 = arith.constant dense<0.000000e+00> : vector<8x4xf32>
    %305 = tpu.matmul %302, %77, %cst_121 {dimension_numbers = #tpu.dot_dimension_numbers<[1], [0], [0], [1], [0, 0, 1, 1], [], []>} : vector<8x4xf32>, vector<4x4xf32>, vector<8x4xf32> -> vector<8x4xf32>
    %306 = arith.addf %304, %305 : vector<8x4xf32>
    %307 = arith.negf %306 : vector<8x4xf32>
    %308 = math.exp %307 : vector<8x4xf32>
    %cst_122 = arith.constant 1.000000e+00 : f32
    %309 = vector.broadcast %cst_122 : f32 to vector<8x4xf32>
    %310 = arith.addf %309, %308 : vector<8x4xf32>
    %311 = arith.divf %309, %310 : vector<8x4xf32>
    %312 = vector.extract_strided_slice %51 {offsets = [2, 0, 0], sizes = [1, 8, 4], strides = [1, 1, 1]} : vector<8x8x4xf32> to vector<1x8x4xf32>
    %313 = vector.shape_cast %312 : vector<1x8x4xf32> to vector<8x4xf32>
    %cst_123 = arith.constant dense<0.000000e+00> : vector<8x4xf32>
    %314 = tpu.matmul %302, %79, %cst_123 {dimension_numbers = #tpu.dot_dimension_numbers<[1], [0], [0], [1], [0, 0, 1, 1], [], []>} : vector<8x4xf32>, vector<4x4xf32>, vector<8x4xf32> -> vector<8x4xf32>
    %315 = arith.addf %313, %314 : vector<8x4xf32>
    %316 = arith.negf %315 : vector<8x4xf32>
    %317 = math.exp %316 : vector<8x4xf32>
    %cst_124 = arith.constant 1.000000e+00 : f32
    %318 = vector.broadcast %cst_124 : f32 to vector<8x4xf32>
    %319 = arith.addf %318, %317 : vector<8x4xf32>
    %320 = arith.divf %318, %319 : vector<8x4xf32>
    %321 = vector.extract_strided_slice %59 {offsets = [2, 0, 0], sizes = [1, 8, 4], strides = [1, 1, 1]} : vector<8x8x4xf32> to vector<1x8x4xf32>
    %322 = vector.shape_cast %321 : vector<1x8x4xf32> to vector<8x4xf32>
    %cst_125 = arith.constant dense<0.000000e+00> : vector<8x4xf32>
    %323 = tpu.matmul %302, %81, %cst_125 {dimension_numbers = #tpu.dot_dimension_numbers<[1], [0], [0], [1], [0, 0, 1, 1], [], []>} : vector<8x4xf32>, vector<4x4xf32>, vector<8x4xf32> -> vector<8x4xf32>
    %324 = arith.addf %322, %323 : vector<8x4xf32>
    %325 = math.tanh %324 : vector<8x4xf32>
    %326 = vector.extract_strided_slice %67 {offsets = [2, 0, 0], sizes = [1, 8, 4], strides = [1, 1, 1]} : vector<8x8x4xf32> to vector<1x8x4xf32>
    %327 = vector.shape_cast %326 : vector<1x8x4xf32> to vector<8x4xf32>
    %cst_126 = arith.constant dense<0.000000e+00> : vector<8x4xf32>
    %328 = tpu.matmul %302, %83, %cst_126 {dimension_numbers = #tpu.dot_dimension_numbers<[1], [0], [0], [1], [0, 0, 1, 1], [], []>} : vector<8x4xf32>, vector<4x4xf32>, vector<8x4xf32> -> vector<8x4xf32>
    %329 = arith.addf %327, %328 : vector<8x4xf32>
    %330 = arith.negf %329 : vector<8x4xf32>
    %331 = math.exp %330 : vector<8x4xf32>
    %cst_127 = arith.constant 1.000000e+00 : f32
    %332 = vector.broadcast %cst_127 : f32 to vector<8x4xf32>
    %333 = arith.addf %332, %331 : vector<8x4xf32>
    %334 = arith.divf %332, %333 : vector<8x4xf32>
    %335 = arith.mulf %320, %300 : vector<8x4xf32>
    %336 = arith.mulf %311, %325 : vector<8x4xf32>
    %337 = arith.addf %335, %336 : vector<8x4xf32>
    %338 = math.tanh %337 : vector<8x4xf32>
    %339 = arith.mulf %334, %338 : vector<8x4xf32>
    %340 = vector.extract_strided_slice %43 {offsets = [1, 0, 0], sizes = [1, 8, 4], strides = [1, 1, 1]} : vector<8x8x4xf32> to vector<1x8x4xf32>
    %341 = vector.shape_cast %340 : vector<1x8x4xf32> to vector<8x4xf32>
    %cst_128 = arith.constant dense<0.000000e+00> : vector<8x4xf32>
    %342 = tpu.matmul %339, %77, %cst_128 {dimension_numbers = #tpu.dot_dimension_numbers<[1], [0], [0], [1], [0, 0, 1, 1], [], []>} : vector<8x4xf32>, vector<4x4xf32>, vector<8x4xf32> -> vector<8x4xf32>
    %343 = arith.addf %341, %342 : vector<8x4xf32>
    %344 = arith.negf %343 : vector<8x4xf32>
    %345 = math.exp %344 : vector<8x4xf32>
    %cst_129 = arith.constant 1.000000e+00 : f32
    %346 = vector.broadcast %cst_129 : f32 to vector<8x4xf32>
    %347 = arith.addf %346, %345 : vector<8x4xf32>
    %348 = arith.divf %346, %347 : vector<8x4xf32>
    %349 = vector.extract_strided_slice %51 {offsets = [1, 0, 0], sizes = [1, 8, 4], strides = [1, 1, 1]} : vector<8x8x4xf32> to vector<1x8x4xf32>
    %350 = vector.shape_cast %349 : vector<1x8x4xf32> to vector<8x4xf32>
    %cst_130 = arith.constant dense<0.000000e+00> : vector<8x4xf32>
    %351 = tpu.matmul %339, %79, %cst_130 {dimension_numbers = #tpu.dot_dimension_numbers<[1], [0], [0], [1], [0, 0, 1, 1], [], []>} : vector<8x4xf32>, vector<4x4xf32>, vector<8x4xf32> -> vector<8x4xf32>
    %352 = arith.addf %350, %351 : vector<8x4xf32>
    %353 = arith.negf %352 : vector<8x4xf32>
    %354 = math.exp %353 : vector<8x4xf32>
    %cst_131 = arith.constant 1.000000e+00 : f32
    %355 = vector.broadcast %cst_131 : f32 to vector<8x4xf32>
    %356 = arith.addf %355, %354 : vector<8x4xf32>
    %357 = arith.divf %355, %356 : vector<8x4xf32>
    %358 = vector.extract_strided_slice %59 {offsets = [1, 0, 0], sizes = [1, 8, 4], strides = [1, 1, 1]} : vector<8x8x4xf32> to vector<1x8x4xf32>
    %359 = vector.shape_cast %358 : vector<1x8x4xf32> to vector<8x4xf32>
    %cst_132 = arith.constant dense<0.000000e+00> : vector<8x4xf32>
    %360 = tpu.matmul %339, %81, %cst_132 {dimension_numbers = #tpu.dot_dimension_numbers<[1], [0], [0], [1], [0, 0, 1, 1], [], []>} : vector<8x4xf32>, vector<4x4xf32>, vector<8x4xf32> -> vector<8x4xf32>
    %361 = arith.addf %359, %360 : vector<8x4xf32>
    %362 = math.tanh %361 : vector<8x4xf32>
    %363 = vector.extract_strided_slice %67 {offsets = [1, 0, 0], sizes = [1, 8, 4], strides = [1, 1, 1]} : vector<8x8x4xf32> to vector<1x8x4xf32>
    %364 = vector.shape_cast %363 : vector<1x8x4xf32> to vector<8x4xf32>
    %cst_133 = arith.constant dense<0.000000e+00> : vector<8x4xf32>
    %365 = tpu.matmul %339, %83, %cst_133 {dimension_numbers = #tpu.dot_dimension_numbers<[1], [0], [0], [1], [0, 0, 1, 1], [], []>} : vector<8x4xf32>, vector<4x4xf32>, vector<8x4xf32> -> vector<8x4xf32>
    %366 = arith.addf %364, %365 : vector<8x4xf32>
    %367 = arith.negf %366 : vector<8x4xf32>
    %368 = math.exp %367 : vector<8x4xf32>
    %cst_134 = arith.constant 1.000000e+00 : f32
    %369 = vector.broadcast %cst_134 : f32 to vector<8x4xf32>
    %370 = arith.addf %369, %368 : vector<8x4xf32>
    %371 = arith.divf %369, %370 : vector<8x4xf32>
    %372 = arith.mulf %357, %337 : vector<8x4xf32>
    %373 = arith.mulf %348, %362 : vector<8x4xf32>
    %374 = arith.addf %372, %373 : vector<8x4xf32>
    %375 = math.tanh %374 : vector<8x4xf32>
    %376 = arith.mulf %371, %375 : vector<8x4xf32>
    %377 = vector.extract_strided_slice %43 {offsets = [0, 0, 0], sizes = [1, 8, 4], strides = [1, 1, 1]} : vector<8x8x4xf32> to vector<1x8x4xf32>
    %378 = vector.shape_cast %377 : vector<1x8x4xf32> to vector<8x4xf32>
    %cst_135 = arith.constant dense<0.000000e+00> : vector<8x4xf32>
    %379 = tpu.matmul %376, %77, %cst_135 {dimension_numbers = #tpu.dot_dimension_numbers<[1], [0], [0], [1], [0, 0, 1, 1], [], []>} : vector<8x4xf32>, vector<4x4xf32>, vector<8x4xf32> -> vector<8x4xf32>
    %380 = arith.addf %378, %379 : vector<8x4xf32>
    %381 = arith.negf %380 : vector<8x4xf32>
    %382 = math.exp %381 : vector<8x4xf32>
    %cst_136 = arith.constant 1.000000e+00 : f32
    %383 = vector.broadcast %cst_136 : f32 to vector<8x4xf32>
    %384 = arith.addf %383, %382 : vector<8x4xf32>
    %385 = arith.divf %383, %384 : vector<8x4xf32>
    %386 = vector.extract_strided_slice %51 {offsets = [0, 0, 0], sizes = [1, 8, 4], strides = [1, 1, 1]} : vector<8x8x4xf32> to vector<1x8x4xf32>
    %387 = vector.shape_cast %386 : vector<1x8x4xf32> to vector<8x4xf32>
    %cst_137 = arith.constant dense<0.000000e+00> : vector<8x4xf32>
    %388 = tpu.matmul %376, %79, %cst_137 {dimension_numbers = #tpu.dot_dimension_numbers<[1], [0], [0], [1], [0, 0, 1, 1], [], []>} : vector<8x4xf32>, vector<4x4xf32>, vector<8x4xf32> -> vector<8x4xf32>
    %389 = arith.addf %387, %388 : vector<8x4xf32>
    %390 = arith.negf %389 : vector<8x4xf32>
    %391 = math.exp %390 : vector<8x4xf32>
    %cst_138 = arith.constant 1.000000e+00 : f32
    %392 = vector.broadcast %cst_138 : f32 to vector<8x4xf32>
    %393 = arith.addf %392, %391 : vector<8x4xf32>
    %394 = arith.divf %392, %393 : vector<8x4xf32>
    %395 = vector.extract_strided_slice %59 {offsets = [0, 0, 0], sizes = [1, 8, 4], strides = [1, 1, 1]} : vector<8x8x4xf32> to vector<1x8x4xf32>
    %396 = vector.shape_cast %395 : vector<1x8x4xf32> to vector<8x4xf32>
    %cst_139 = arith.constant dense<0.000000e+00> : vector<8x4xf32>
    %397 = tpu.matmul %376, %81, %cst_139 {dimension_numbers = #tpu.dot_dimension_numbers<[1], [0], [0], [1], [0, 0, 1, 1], [], []>} : vector<8x4xf32>, vector<4x4xf32>, vector<8x4xf32> -> vector<8x4xf32>
    %398 = arith.addf %396, %397 : vector<8x4xf32>
    %399 = math.tanh %398 : vector<8x4xf32>
    %400 = vector.extract_strided_slice %67 {offsets = [0, 0, 0], sizes = [1, 8, 4], strides = [1, 1, 1]} : vector<8x8x4xf32> to vector<1x8x4xf32>
    %401 = vector.shape_cast %400 : vector<1x8x4xf32> to vector<8x4xf32>
    %cst_140 = arith.constant dense<0.000000e+00> : vector<8x4xf32>
    %402 = tpu.matmul %376, %83, %cst_140 {dimension_numbers = #tpu.dot_dimension_numbers<[1], [0], [0], [1], [0, 0, 1, 1], [], []>} : vector<8x4xf32>, vector<4x4xf32>, vector<8x4xf32> -> vector<8x4xf32>
    %403 = arith.addf %401, %402 : vector<8x4xf32>
    %404 = arith.negf %403 : vector<8x4xf32>
    %405 = math.exp %404 : vector<8x4xf32>
    %cst_141 = arith.constant 1.000000e+00 : f32
    %406 = vector.broadcast %cst_141 : f32 to vector<8x4xf32>
    %407 = arith.addf %406, %405 : vector<8x4xf32>
    %408 = arith.divf %406, %407 : vector<8x4xf32>
    %409 = arith.mulf %394, %374 : vector<8x4xf32>
    %410 = arith.mulf %385, %399 : vector<8x4xf32>
    %411 = arith.addf %409, %410 : vector<8x4xf32>
    %412 = math.tanh %411 : vector<8x4xf32>
    %413 = arith.mulf %408, %412 : vector<8x4xf32>
    %c0_142 = arith.constant 0 : index
    %c0_143 = arith.constant 0 : index
    %c0_144 = arith.constant 0 : index
    %414 = vector.load %arg7[%c0_142, %c0_143, %c0_144] : memref<2x4x8xf32, #tpu.memory_space<vmem>>, vector<1x4x8xf32>
    %415 = vector.shape_cast %414 : vector<1x4x8xf32> to vector<4x8xf32>
    %cst_145 = arith.constant dense<0.000000e+00> : vector<8x8xf32>
    %416 = tpu.matmul %117, %415, %cst_145 {dimension_numbers = #tpu.dot_dimension_numbers<[1], [0], [0], [1], [0, 0, 1, 1], [], []>} : vector<8x4xf32>, vector<4x8xf32>, vector<8x8xf32> -> vector<8x8xf32>
    %c1_146 = arith.constant 1 : index
    %c0_147 = arith.constant 0 : index
    %c0_148 = arith.constant 0 : index
    %417 = vector.load %arg7[%c1_146, %c0_147, %c0_148] : memref<2x4x8xf32, #tpu.memory_space<vmem>>, vector<1x4x8xf32>
    %418 = vector.shape_cast %417 : vector<1x4x8xf32> to vector<4x8xf32>
    %cst_149 = arith.constant dense<0.000000e+00> : vector<8x8xf32>
    %419 = tpu.matmul %413, %418, %cst_149 {dimension_numbers = #tpu.dot_dimension_numbers<[1], [0], [0], [1], [0, 0, 1, 1], [], []>} : vector<8x4xf32>, vector<4x8xf32>, vector<8x8xf32> -> vector<8x8xf32>
    %420 = arith.addf %416, %419 : vector<8x8xf32>
    %c0_150 = arith.constant 0 : index
    %c0_151 = arith.constant 0 : index
    %421 = vector.load %arg8[%c0_150, %c0_151] : memref<1x8xf32, #tpu.memory_space<vmem>>, vector<1x8xf32>
    %422 = vector.broadcast %421 : vector<1x8xf32> to vector<8x8xf32>
    %423 = arith.addf %420, %422 : vector<8x8xf32>
    %cst_152 = arith.constant 0.000000e+00 : f32
    %424 = vector.broadcast %cst_152 : f32 to vector<8x8xf32>
    %425 = arith.cmpf ogt, %423, %424 : vector<8x8xf32>
    %cst_153 = arith.constant 0.00999999977 : f32
    %426 = vector.broadcast %cst_153 : f32 to vector<8x8xf32>
    %427 = arith.mulf %426, %423 : vector<8x8xf32>
    %428 = arith.select %425, %423, %427 : vector<8x8xi1>, vector<8x8xf32>
    %c0_154 = arith.constant 0 : index
    %c0_155 = arith.constant 0 : index
    %429 = vector.load %arg9[%c0_154, %c0_155] : memref<8x128xf32, #tpu.memory_space<vmem>>, vector<8x128xf32>
    %cst_156 = arith.constant dense<0.000000e+00> : vector<8x128xf32>
    %430 = tpu.matmul %428, %429, %cst_156 {dimension_numbers = #tpu.dot_dimension_numbers<[1], [0], [0], [1], [0, 0, 1, 1], [], []>} : vector<8x8xf32>, vector<8x128xf32>, vector<8x128xf32> -> vector<8x128xf32>
    %c0_157 = arith.constant 0 : index
    %c0_158 = arith.constant 0 : index
    %431 = vector.load %arg10[%c0_157, %c0_158] : memref<1x128xf32, #tpu.memory_space<vmem>>, vector<1x128xf32>
    %432 = vector.broadcast %431 : vector<1x128xf32> to vector<8x128xf32>
    %433 = arith.addf %430, %432 : vector<8x128xf32>
    %c0_159 = arith.constant 0 : index
    %c0_160 = arith.constant 0 : index
    %434 = vector.load %arg11[%c0_159, %c0_160] : memref<8x128xf32, #tpu.memory_space<vmem>>, vector<8x128xf32>
    tpu.vector_store %arg11[%c0_159, %c0_160], %433 {strides = array<i32>} : memref<8x128xf32, #tpu.memory_space<vmem>>, vector<8x128xf32>,
    return
  }
}

</mosaic_0001>

<bundles_post_ra>
// kernel: tpu_custom_call.1
= control target key start
LH: loop header
LB: loop body
LE: loop exit
PB: predicated region body
PF: predicated region fallthrough
CT: control target
= control target key end

     0   :  { %vm56_vm0 = vcmask 1043456   ;;  %vm52_vm1 = vcmask 31744   ;;  %s2789_s0 = inlined_call_operand.vmem [shape: f32[8,8,4], index: 0, kind: input, shape index: {}]   ;;  %s2790_s1 = inlined_call_operand.vmem [shape: f32[4,4,4], index: 1, kind: input, shape index: {}]   ;;  %s2791_s2 = inlined_call_operand.vmem [shape: f32[4,4,4], index: 2, kind: input, shape index: {}]   ;;  %s2792_s3 = inlined_call_operand.vmem [shape: f32[4,1,4], index: 3, kind: input, shape index: {}]   ;;  %s2793_s4 = inlined_call_operand.vmem [shape: f32[4,4,4], index: 4, kind: input, shape index: {}]   ;;  %s2794_s5 = inlined_call_operand.vmem [shape: f32[4,4,4], index: 5, kind: input, shape index: {}]   ;;  %s2795_s6 = inlined_call_operand.vmem [shape: f32[4,1,4], index: 6, kind: input, shape index: {}]   ;;  %s2796_s7 = inlined_call_operand.vmem [shape: f32[2,4,8], index: 7, kind: input, shape index: {}]   ;;  %s2797_s8 = inlined_call_operand.vmem [shape: f32[1,8], index: 8, kind: input, shape index: {}]   ;;  %s2798_s9 = inlined_call_operand.vmem [shape: f32[8,128], index: 9, kind: input, shape index: {}]   ;;  %s2799_s10 = inlined_call_operand.vmem [shape: f32[1,128], index: 10, kind: input, shape index: {}]   ;;  %s2800_s11 = inlined_call_operand.hbm [shape: f32[8,128], index: 11, kind: output, shape index: {}]  }
   0x1   :  { %v47_v0 = vld [vmem:[%s2790_s1] sm:$0xf]  ;;  %v1889_v1 = vld [vmem:[%s2790_s1 + $0x4] sm:$0xf]  ;;  %v1893_v3 = vld [vmem:[%s2790_s1 + $0x8] sm:$0xf] }
   0x2   :  { %v39_v2 = vld [vmem:[%s2789_s0] sm:$0xff]  ;;  %1887 = vmatpush.msk.msra.mxu0 %vm56_vm0, %v47_v0  ;;  %1891 = vmatpush.msk.msra.mxu1 %vm56_vm0, %v1889_v1  ;;  %v1897_v4 = vld [vmem:[%s2790_s1 + $0xc] sm:$0xf]  ;;  %v1921_v8 = vld [vmem:[%s2793_s4 + $0x8] sm:$0xf] }
   0x3   :  { %1895 = vmatpush.msk.msra.mxu2 %vm56_vm0, %v1893_v3  ;;  %1899 = vmatpush.msk.msra.mxu3 %vm56_vm0, %v1897_v4  ;;  %v170_v5 = vld [vmem:[%s2793_s4] sm:$0xf]  ;;  %v1910_v6 = vld [vmem:[%s2793_s4 + $0x4] sm:$0xf]  ;;  %v1932_v7 = vld [vmem:[%s2793_s4 + $0xc] sm:$0xf] }
   0x4   :  { %1888 = vmatmul.msk.f32.vlgmr.msra.gmra.mxu0 %vm52_vm1, %v39_v2  ;;  %1892 = vmatmul.msk.f32.vlgmr.msra.gmra.mxu1 %vm52_vm1, %v39_v2  ;;  %v393_v9 = vld [vmem:[%s2791_s2] sm:$0xf]  ;;  %v1943_v10 = vld [vmem:[%s2791_s2 + $0x4] sm:$0xf]  ;;  %v1945_v11 = vld [vmem:[%s2791_s2 + $0xc] sm:$0xf] }
   0x5   :  { %1896 = vmatmul.msk.f32.vlgmr.msra.gmra.mxu2 %vm52_vm1, %v39_v2  ;;  %1900 = vmatmul.msk.f32.vlgmr.msra.gmra.mxu3 %vm52_vm1, %v39_v2  ;;  %v1944_v12 = vld [vmem:[%s2791_s2 + $0x8] sm:$0xf] }
   0x6   :  { %1901 = vmatpush.msk.msrb.mxu0 %vm56_vm0, %v170_v5  ;;  %1912 = vmatpush.msk.msrb.mxu1 %vm56_vm0, %v1910_v6 }
   0x7   :  { %1934 = vmatpush.msk.msrb.mxu3 %vm56_vm0, %v1932_v7  ;;  %1923 = vmatpush.msk.msrb.mxu2 %vm56_vm0, %v1921_v8 }
   0x8   :  { %1949 = vmatpush.msk.msra.mxu0 %vm56_vm0, %v393_v9  ;;  %1951 = vmatpush.msk.msra.mxu1 %vm56_vm0, %v1943_v10 }
   0x9   :  { %1954 = vmatpush.msk.msra.mxu3 %vm56_vm0, %v1945_v11  ;;  %1953 = vmatpush.msk.msra.mxu2 %vm56_vm0, %v1944_v12 }
   0xa   :  { %16 = vsyncpa [#allocation3], 0  ;;  %v40_v13 = vld [vmem:[%s2789_s0 + $0x8] sm:$0xff]  ;;  %v41_v14 = vld [vmem:[%s2789_s0 + $0x10] sm:$0xff]  ;;  %v2232_v24 = vmov 0.0   ;;  %s2233_s27 = smov [#allocation2]  }
   0xb   :  { %v42_v15 = vld [vmem:[%s2789_s0 + $0x18] sm:$0xff]  ;;  %v43_v16 = vld [vmem:[%s2789_s0 + $0x20] sm:$0xff]  ;;  %v2394_v19 = vld [vmem:[%s2794_s5 + $0xc] sm:$0xf]  ;;  %s1878_s29 = sshll.u32 %s2800_s11, 4  ;;  %s1879_s29 = int_to_ptr.hbm [resolvable:$true] %s1878_s29 }
   0xc   :  { %1902 = vmatmul.msk.f32.vlgmr.msrb.gmra.mxu0 %vm52_vm1, %v39_v2  ;;  %1913 = vmatmul.msk.f32.vlgmr.msrb.gmra.mxu1 %vm52_vm1, %v39_v2  ;;  %v2384_v17 = vld [vmem:[%s2794_s5] sm:$0xf]  ;;  %v2389_v18 = vld [vmem:[%s2794_s5 + $0x4] sm:$0xf]  ;;  %v44_v20 = vld [vmem:[%s2789_s0 + $0x28] sm:$0xff] }
   0xd   :  { %1924 = vmatmul.msk.f32.vlgmr.msrb.gmra.mxu2 %vm52_vm1, %v39_v2  ;;  %1935 = vmatmul.msk.f32.vlgmr.msrb.gmra.mxu3 %vm52_vm1, %v39_v2  ;;  %v2410_v21 = vld [vmem:[%s2794_s5 + $0x8] sm:$0xf]  ;;  %v45_v22 = vld [vmem:[%s2789_s0 + $0x30] sm:$0xff]  ;;  %v46_v23 = vld [vmem:[%s2789_s0 + $0x38] sm:$0xff] }
   0xe   :  { %1956 = vmatpush.msk.msrb.mxu0 %vm56_vm0, %v2384_v17  ;;  %1958 = vmatpush.msk.msrb.mxu1 %vm56_vm0, %v2389_v18  ;;  %v2453_v27 = vld [vmem:[%s2795_s6] ss:$0 sm:$0xff]  ;;  %v2458_v28 = vld [vmem:[%s2795_s6 + $0x1] ss:$0 sm:$0xff]  ;;  %v2473_v35 = vld [vmem:[%s2795_s6 + $0x2] ss:$0 sm:$0xff] }
   0xf   :  { %1961 = vmatpush.msk.msrb.mxu3 %vm56_vm0, %v2394_v19  ;;  %1960 = vmatpush.msk.msrb.mxu2 %vm56_vm0, %v2410_v21  ;;  %v2478_v36 = vld [vmem:[%s2795_s6 + $0x3] ss:$0 sm:$0xff] }
  0x14   :  { %1903 = vmatmul.msk.f32.gmra.mxu0 %vm52_vm1, %v40_v13  ;;  %1914 = vmatmul.msk.f32.gmra.mxu1 %vm52_vm1, %v40_v13 }
  0x15   :  { %1925 = vmatmul.msk.f32.gmra.mxu2 %vm52_vm1, %v40_v13  ;;  %1936 = vmatmul.msk.f32.gmra.mxu3 %vm52_vm1, %v40_v13 }
  0x1c   :  { %1904 = vmatmul.msk.f32.gmra.mxu0 %vm52_vm1, %v41_v14  ;;  %1915 = vmatmul.msk.f32.gmra.mxu1 %vm52_vm1, %v41_v14 }
  0x1d   :  { %1926 = vmatmul.msk.f32.gmra.mxu2 %vm52_vm1, %v41_v14  ;;  %1937 = vmatmul.msk.f32.gmra.mxu3 %vm52_vm1, %v41_v14 }
  0x24   :  { %1905 = vmatmul.msk.f32.gmra.mxu0 %vm52_vm1, %v42_v15  ;;  %1916 = vmatmul.msk.f32.gmra.mxu1 %vm52_vm1, %v42_v15 }
  0x25   :  { %1927 = vmatmul.msk.f32.gmra.mxu2 %vm52_vm1, %v42_v15  ;;  %1938 = vmatmul.msk.f32.gmra.mxu3 %vm52_vm1, %v42_v15 }
  0x2c   :  { %1906 = vmatmul.msk.f32.gmra.mxu0 %vm52_vm1, %v43_v16  ;;  %1917 = vmatmul.msk.f32.gmra.mxu1 %vm52_vm1, %v43_v16 }
  0x2d   :  { %1928 = vmatmul.msk.f32.gmra.mxu2 %vm52_vm1, %v43_v16  ;;  %1939 = vmatmul.msk.f32.gmra.mxu3 %vm52_vm1, %v43_v16 }
  0x34   :  { %1907 = vmatmul.msk.f32.gmra.mxu0 %vm52_vm1, %v44_v20  ;;  %1918 = vmatmul.msk.f32.gmra.mxu1 %vm52_vm1, %v44_v20 }
  0x35   :  { %1929 = vmatmul.msk.f32.gmra.mxu2 %vm52_vm1, %v44_v20  ;;  %1940 = vmatmul.msk.f32.gmra.mxu3 %vm52_vm1, %v44_v20 }
  0x3c   :  { %1908 = vmatmul.msk.f32.gmra.mxu0 %vm52_vm1, %v45_v22  ;;  %1919 = vmatmul.msk.f32.gmra.mxu1 %vm52_vm1, %v45_v22 }
  0x3d   :  { %1930 = vmatmul.msk.f32.gmra.mxu2 %vm52_vm1, %v45_v22  ;;  %1941 = vmatmul.msk.f32.gmra.mxu3 %vm52_vm1, %v45_v22 }
  0x44   :  { %1909 = vmatmul.msk.f32.gmra.mxu0 %vm52_vm1, %v46_v23  ;;  %1920 = vmatmul.msk.f32.gmra.mxu1 %vm52_vm1, %v46_v23 }
  0x45   :  { %1931 = vmatmul.msk.f32.gmra.mxu2 %vm52_vm1, %v46_v23  ;;  %1942 = vmatmul.msk.f32.gmra.mxu3 %vm52_vm1, %v46_v23 }
  0x4c   :  { %429 = vmatmul.f32.vlgmr.msra.gmra.mxu0 %v2232_v24  ;;  %472 = vmatmul.f32.vlgmr.msra.gmra.mxu1 %v2232_v24 }
  0x4d   :  { %515 = vmatmul.f32.vlgmr.msra.gmra.mxu2 %v2232_v24  ;;  %540 = vmatmul.f32.vlgmr.msra.gmra.mxu3 %v2232_v24 }
  0x4e   :  { %1963 = vmatpush.msk.msra.mxu0 %vm56_vm0, %v2384_v17  ;;  %1966 = vmatpush.msk.msra.mxu1 %vm56_vm0, %v2389_v18 }
  0x4f   :  { %1971 = vmatpush.msk.msra.mxu3 %vm56_vm0, %v2394_v19  ;;  %1969 = vmatpush.msk.msra.mxu2 %vm56_vm0, %v2410_v21 }
  0x54   :  { %588 = vmatmul.f32.vlgmr.msrb.gmra.mxu0 %v2232_v24  ;;  %631 = vmatmul.f32.vlgmr.msrb.gmra.mxu1 %v2232_v24 }
  0x55   :  { %699 = vmatmul.f32.vlgmr.msrb.gmra.mxu3 %v2232_v24  ;;  %674 = vmatmul.f32.vlgmr.msrb.gmra.mxu2 %v2232_v24 }
  0x56   :  { %1974 = vmatpush.msk.msrb.mxu0 %vm56_vm0, %v2384_v17  ;;  %1977 = vmatpush.msk.msrb.mxu1 %vm56_vm0, %v2389_v18 }
  0x57   :  { %1982 = vmatpush.msk.msrb.mxu3 %vm56_vm0, %v2394_v19  ;;  %1980 = vmatpush.msk.msrb.mxu2 %vm56_vm0, %v2410_v21 }
  0x81   :  { %v2446_v25 = vpop.f32.mrf.mxu0  ;;  %v2448_v26 = vpop.f32.mrf.mxu1 }
  0x88   :  { %v2460_v29 = vpop.f32.mrf.mxu2  ;;  %v2462_v30 = vpop.f32.mrf.mxu3 }
  0x89   :  { %v216_v31 = vpop.f32.mrf.mxu0  ;;  %v267_v32 = vpop.f32.mrf.mxu1 }
  0x8a   :  { %v2465_v33 = vadd.f32 %v2453_v27, %v216_v31  ;;  %v2468_v34 = vadd.f32 %v2458_v28, %v267_v32 }
  0x90   :  { %v318_v37 = vpop.f32.mrf.mxu2  ;;  %v369_v38 = vpop.f32.mrf.mxu3 }
  0x91   :  { %v2481_v39 = vadd.f32 %v2473_v35, %v318_v37  ;;  %v2484_v40 = vadd.f32 %v2478_v36, %v369_v38  ;;  %v219_v41 = vpop.f32.mrf.mxu0  ;;  %v270_v42 = vpop.f32.mrf.mxu1 }
  0x92   :  { %v2487_v43 = vadd.f32 %v2453_v27, %v219_v41  ;;  %v2490_v44 = vadd.f32 %v2458_v28, %v270_v42 }
  0x98   :  { %v321_v45 = vpop.f32.mrf.mxu2  ;;  %v372_v46 = vpop.f32.mrf.mxu3 }
  0x99   :  { %v2493_v47 = vadd.f32 %v2473_v35, %v321_v45  ;;  %v2496_v48 = vadd.f32 %v2478_v36, %v372_v46  ;;  %v222_v49 = vpop.f32.mrf.mxu0  ;;  %v273_v50 = vpop.f32.mrf.mxu1  ;;  %v2048_v45 = vld [vmem:[%s2792_s3] ss:$0 sm:$0xff]  ;;  %v2049_v46 = vld [vmem:[%s2792_s3 + $0x1] ss:$0 sm:$0xff] }
  0x9a   :  { %v2499_v51 = vadd.f32 %v2453_v27, %v222_v49  ;;  %v2502_v52 = vadd.f32 %v2458_v28, %v273_v50  ;;  %v78_v49 = vadd.f32 %v2048_v45, %v2446_v25  ;;  %v108_v50 = vadd.f32 %v2049_v46, %v2448_v26 }
  0xa0   :  { %v324_v53 = vpop.f32.mrf.mxu2  ;;  %v375_v54 = vpop.f32.mrf.mxu3 }
  0xa1   :  { %v2505_v55 = vadd.f32 %v2473_v35, %v324_v53  ;;  %v2508_v56 = vadd.f32 %v2478_v36, %v375_v54  ;;  %v225_v57 = vpop.f32.mrf.mxu0  ;;  %v276_v58 = vpop.f32.mrf.mxu1 }
  0xa2   :  { %v2511_v59 = vadd.f32 %v2453_v27, %v225_v57  ;;  %v2514_v60 = vadd.f32 %v2458_v28, %v276_v58 }
  0xa8   :  { %v327_v61 = vpop.f32.mrf.mxu2  ;;  %v378_v62 = vpop.f32.mrf.mxu3 }
  0xa9   :  { %v2517_v63 = vadd.f32 %v2473_v35, %v327_v61  ;;  %v2520_v0 = vadd.f32 %v2478_v36, %v378_v62  ;;  %v228_v1 = vpop.f32.mrf.mxu0  ;;  %v279_v2 = vpop.f32.mrf.mxu1 }
  0xaa   :  { %v2523_v3 = vadd.f32 %v2453_v27, %v228_v1  ;;  %v2526_v4 = vadd.f32 %v2458_v28, %v279_v2  ;;  %v2050_v1 = vld [vmem:[%s2792_s3 + $0x2] ss:$0 sm:$0xff]  ;;  %v2051_v2 = vld [vmem:[%s2792_s3 + $0x3] ss:$0 sm:$0xff] }
  0xab   :  { %v138_v25 = vadd.f32 %v2050_v1, %v2460_v29  ;;  %v168_v26 = vadd.f32 %v2051_v2, %v2462_v30 }
  0xb0   :  { %v330_v5 = vpop.f32.mrf.mxu2  ;;  %v381_v6 = vpop.f32.mrf.mxu3 }
  0xb1   :  { %v2529_v7 = vadd.f32 %v2473_v35, %v330_v5  ;;  %v2532_v8 = vadd.f32 %v2478_v36, %v381_v6  ;;  %v231_v9 = vpop.f32.mrf.mxu0  ;;  %v282_v10 = vpop.f32.mrf.mxu1 }
  0xb2   :  { %v2535_v11 = vadd.f32 %v2453_v27, %v231_v9  ;;  %v2538_v12 = vadd.f32 %v2458_v28, %v282_v10 }
  0xb8   :  { %v333_v13 = vpop.f32.mrf.mxu2  ;;  %v384_v14 = vpop.f32.mrf.mxu3 }
  0xb9   :  { %v2541_v15 = vadd.f32 %v2473_v35, %v333_v13  ;;  %v2544_v16 = vadd.f32 %v2478_v36, %v384_v14  ;;  %v234_v20 = vpop.f32.mrf.mxu0  ;;  %v285_v22 = vpop.f32.mrf.mxu1 }
  0xba   :  { %v2547_v23 = vadd.f32 %v2453_v27, %v234_v20  ;;  %v2550_v24 = vadd.f32 %v2458_v28, %v285_v22 }
  0xc0   :  { %v336_v31 = vpop.f32.mrf.mxu2  ;;  %v387_v32 = vpop.f32.mrf.mxu3 }
  0xc1   :  { %v2553_v37 = vadd.f32 %v2473_v35, %v336_v31  ;;  %v2556_v38 = vadd.f32 %v2478_v36, %v387_v32  ;;  %v237_v41 = vpop.f32.mrf.mxu0  ;;  %v288_v42 = vpop.f32.mrf.mxu1 }
  0xc2   :  { %v238_v9 = vadd.f32 %v2453_v27, %v237_v41  ;;  %v289_v10 = vadd.f32 %v2458_v28, %v288_v42 }
  0xc8   :  { %v339_v53 = vpop.f32.mrf.mxu2  ;;  %v390_v54 = vpop.f32.mrf.mxu3 }
  0xc9   :  { %v430_v57 = vpop.f32.mrf.mxu0  ;;  %v473_v58 = vpop.f32.mrf.mxu1  ;;  %v391_v27 = vadd.f32 %v2478_v36, %v390_v54  ;;  %v340_v54 = vadd.f32 %v2473_v35, %v339_v53 }
  0xca   :  { %v433_v61 = vadd.f32 %v430_v57, %v78_v49  ;;  %v476_v62 = vadd.f32 %v473_v58, %v108_v50 }
  0xcc   :  { %v1950_v5 = vmul.f32 -1.442695, %v433_v61  ;;  %v1952_v6 = vmul.f32 -1.442695, %v476_v62 }
  0xce   :  { %2058 = vpow2.f32 %v1950_v5 }
  0xcf   :  { %2060 = vpow2.f32 %v1952_v6 }
  0xd0   :  { %v516_v13 = vpop.f32.mrf.mxu2  ;;  %v541_v14 = vpop.f32.mrf.mxu3 }
  0xd1   :  { %v519_v20 = vadd.f32 %v516_v13, %v138_v25  ;;  %v544_v22 = vadd.f32 %v541_v14, %v168_v26  ;;  %v589_v31 = vpop.f32.mrf.mxu0  ;;  %v632_v32 = vpop.f32.mrf.mxu1 }
  0xd2   :  { %v592_v45 = vadd.f32 %v589_v31, %v238_v9  ;;  %v635_v46 = vadd.f32 %v632_v32, %v289_v10 }
  0xd3   :  { %v1955_v49 = vmul.f32 -1.442695, %v544_v22 }
  0xd4   :  { %v2059_v50 = vpop.eup %2058  ;;  %v1957_v57 = vmul.f32 -1.442695, %v592_v45  ;;  %v1959_v30 = vmul.f32 -1.442695, %v635_v46 }
  0xd5   :  { %v2061_v58 = vpop.eup %2060  ;;  %v437_v29 = vadd.f32 1.0, %v2059_v50  ;;  %2062 = vpow2.f32 %v1955_v49 }
  0xd6   :  { %v480_v61 = vadd.f32 1.0, %v2061_v58  ;;  %2064 = vpow2.f32 %v1957_v57 }
  0xd7   :  { %2066 = vrcp.f32 %v437_v29  ;;  %v447_v13 = vand.u32 2147483647, %v437_v29  ;;  %v449_v32 = vand.u32 2147483648, %v437_v29  ;;  %vm443_vm4 = vweird.f32 %v437_v29 }
  0xd8   :  { %2068 = vrcp.f32 %v480_v61  ;;  %v700_v28 = vpop.f32.mrf.mxu3  ;;  %v492_v31 = vand.u32 2147483648, %v480_v61  ;;  %v675_v45 = vpop.f32.mrf.mxu2  ;;  %v490_v49 = vand.u32 2147483647, %v480_v61  ;;  %vm486_vm3 = vweird.f32 %v480_v61 }
  0xd9   :  { %2070 = vpow2.f32 %v1959_v30  ;;  %v703_v41 = vadd.f32 %v700_v28, %v391_v27  ;;  %vm448_vm6 = vcmp.eq.f32.partialorder %v447_v13, 8.507059e+37  ;;  %v678_v30 = vadd.f32 %v675_v45, %v340_v54 }
  0xda   :  { %v450_v28 = vor.u32 1.1754944e-38, %v449_v32  ;;  %vm491_vm9 = vcmp.eq.f32.partialorder %v490_v49, 8.507059e+37 }
  0xdb   :  { %v2063_v42 = vpop.eup %2062  ;;  %v1962_v62 = vmul.f32 -1.442695, %v703_v41 }
  0xdc   :  { %v2065_v1 = vpop.eup %2064  ;;  %v2577_v2 = vadd.f32 1.0, %v2063_v42 }
  0xdd   :  { %v2067_v5 = vpop.eup %2066  ;;  %v2579_v6 = vadd.f32 1.0, %v2065_v1  ;;  %2072 = vpow2.f32 %v1962_v62 }
  0xde   :  { %v2069_v25 = vpop.eup %2068  ;;  %v439_v26 = vmul.f32 %v2067_v5, %v437_v29  ;;  %2074 = vrcp.f32 %v2577_v2  ;;  %vm444_vm2 = vweird.f32 %v2067_v5  ;;  %vm554_vm15 = vweird.f32 %v2577_v2 }
  0xdf   :  { %v2071_v9 = vpop.eup %2070  ;;  %v482_v36 = vmul.f32 %v2069_v25, %v480_v61  ;;  %2076 = vrcp.f32 %v2579_v6  ;;  %vm487_vm5 = vweird.f32 %v2069_v25  ;;  %vm445_vm7 = vmor %vm443_vm4, %vm444_vm2  ;;  %v608_v54 = vand.u32 2147483648, %v2579_v6 }
  0xe0   :  { %v440_v10 = vsub.f32 1.0, %v439_v26  ;;  %v2584_v14 = vadd.f32 1.0, %v2071_v9  ;;  %2078 = vtanh.f32 %v519_v20  ;;  %v493_v20 = vor.u32 1.1754944e-38, %v492_v31  ;;  %vm488_vm8 = vmor %vm486_vm3, %vm487_vm5 }
  0xe1   :  { %v483_v22 = vsub.f32 1.0, %v482_v36  ;;  %vm602_vm10 = vweird.f32 %v2579_v6 }
  0xe2   :  { %v441_v46 = vmul.f32 %v2067_v5, %v440_v10  ;;  %2080 = vrcp.f32 %v2584_v14  ;;  %vm645_vm4 = vweird.f32 %v2584_v14 }
  0xe3   :  { %v2073_v50 = vpop.eup %2072  ;;  %v484_v57 = vmul.f32 %v2069_v25, %v483_v22 }
  0xe4   :  { %v2587_v35 = vpop.eup %2074  ;;  %v442_v53 = vadd.f32 %v2067_v5, %v441_v46  ;;  %v2589_v58 = vadd.f32 1.0, %v2073_v50 }
  0xe5   :  { %v2077_v27 = vpop.eup %2076  ;;  %v485_v41 = vadd.f32 %v2069_v25, %v484_v57  ;;  %v550_v42 = vmul.f32 %v2587_v35, %v2577_v2  ;;  %v651_v57 = vand.u32 2147483648, %v2584_v14  ;;  %vm555_vm12 = vweird.f32 %v2587_v35 }
  0xe6   :  { %v446_v62 = vsel %vm445_vm7, %v2067_v5, %v442_v53  ;;  %v598_v29 = vmul.f32 %v2077_v27, %v2579_v6  ;;  %2082 = vrcp.f32 %v2589_v58  ;;  %v2079_v1 = vpop.eup %2078  ;;  %v560_v5 = vand.u32 2147483648, %v2577_v2  ;;  %vm2612_vm3 = vmor %vm554_vm15, %vm555_vm12 }
  0xe7   :  { %v451_v26 = vsel %vm448_vm6, %v450_v28, %v446_v62  ;;  %v489_v9 = vsel %vm488_vm8, %v2069_v25, %v485_v41  ;;  %v551_v36 = vsub.f32 1.0, %v550_v42  ;;  %2084 = vtanh.f32 %v678_v30 }
  0xe8   :  { %v2081_v10 = vpop.eup %2080  ;;  %v494_v13 = vsel %vm491_vm9, %v493_v20, %v489_v9  ;;  %v565_v22 = vmul.f32 %v2079_v1, %v451_v26  ;;  %v599_v31 = vsub.f32 1.0, %v598_v29  ;;  %vm603_vm11 = vweird.f32 %v2077_v27 }
  0xe9   :  { %v564_v32 = vmul.f32 0.0, %v494_v13  ;;  %v552_v61 = vmul.f32 %v2587_v35, %v551_v36  ;;  %v641_v45 = vmul.f32 %v2081_v10, %v2584_v14  ;;  %v606_v25 = vand.u32 2147483647, %v2579_v6  ;;  %vm604_vm13 = vmor %vm602_vm10, %vm603_vm11 }
  0xea   :  { %v600_v46 = vmul.f32 %v2077_v27, %v599_v31  ;;  %v609_v53 = vor.u32 1.1754944e-38, %v608_v54  ;;  %v649_v28 = vand.u32 2147483647, %v2584_v14  ;;  %vm646_vm14 = vweird.f32 %v2081_v10 }
  0xeb   :  { %v566_v49 = vadd.f32 %v565_v22, %v564_v32  ;;  %v642_v50 = vsub.f32 1.0, %v641_v45  ;;  %v553_v41 = vadd.f32 %v2587_v35, %v552_v61  ;;  %vm607_vm2 = vcmp.eq.f32.partialorder %v606_v25, 8.507059e+37  ;;  %vm647_vm5 = vmor %vm645_vm4, %vm646_vm14 }
  0xec   :  { %v2083_v20 = vpop.eup %2082  ;;  %v601_v30 = vadd.f32 %v2077_v27, %v600_v46  ;;  %v558_v26 = vand.u32 2147483647, %v2577_v2  ;;  %v652_v22 = vor.u32 1.1754944e-38, %v651_v57  ;;  %v561_v31 = vor.u32 1.1754944e-38, %v560_v5 }
  0xed   :  { %2086 = vtanh.f32 %v566_v49  ;;  %v643_v42 = vmul.f32 %v2081_v10, %v642_v50  ;;  %v709_v62 = vmul.f32 %v2083_v20, %v2589_v58  ;;  %v2085_v29 = vpop.eup %2084  ;;  %v557_v6 = vsel %vm2612_vm3, %v2587_v35, %v553_v41 }
  0xee   :  { %v605_v1 = vsel %vm604_vm13, %v2077_v27, %v601_v30  ;;  %vm650_vm6 = vcmp.eq.f32.partialorder %v649_v28, 8.507059e+37  ;;  %vm559_vm7 = vcmp.eq.f32.partialorder %v558_v26, 8.507059e+37  ;;  %vm714_vm8 = vweird.f32 %v2083_v20 }
  0xef   :  { %v710_v36 = vsub.f32 1.0, %v709_v62  ;;  %v610_v54 = vsel %vm607_vm2, %v609_v53, %v605_v1  ;;  %v644_v13 = vadd.f32 %v2081_v10, %v643_v42  ;;  %v562_v25 = vsel %vm559_vm7, %v561_v31, %v557_v6 }
  0xf0   :  { %v724_v32 = vmul.f32 %v2085_v29, %v610_v54  ;;  %v719_v57 = vand.u32 2147483648, %v2589_v58  ;;  %vm713_vm9 = vweird.f32 %v2589_v58  ;;  %v717_v35 = vand.u32 2147483647, %v2589_v58 }
  0xf1   :  { %v648_v27 = vsel %vm647_vm5, %v2081_v10, %v644_v13  ;;  %v711_v2 = vmul.f32 %v2083_v20, %v710_v36  ;;  %vm715_vm10 = vmor %vm713_vm9, %vm714_vm8 }
  0xf2   :  { %v653_v61 = vsel %vm650_vm6, %v652_v22, %v648_v27  ;;  %v720_v5 = vor.u32 1.1754944e-38, %v719_v57  ;;  %vm718_vm11 = vcmp.eq.f32.partialorder %v717_v35, 8.507059e+37 }
  0xf3   :  { %v2087_v45 = vpop.eup %2086  ;;  %v723_v46 = vmul.f32 0.0, %v653_v61  ;;  %v712_v50 = vadd.f32 %v2083_v20, %v711_v2 }
  0xf4   :  { %v2620_v14 = vmul.f32 %v2087_v45, %v562_v25 }
  0xf5   :  { %v2622_v49 = vadd.f32 %v724_v32, %v723_v46  ;;  %v716_v10 = vsel %vm715_vm10, %v2083_v20, %v712_v50 }
  0xf6   :  { %v721_v30 = vsel %vm718_vm11, %v720_v5, %v716_v10 }
  0xf7   :  { %2088 = vtanh.f32 %v2622_v49 }
  0xfd   :  { %v2089_v53 = vpop.eup %2088 }
  0xfe   :  { %v727_v28 = vmul.f32 %v2089_v53, %v721_v30 }
 0x100   :  { %1964 = vmatmul.msk.f32.vlgmr.msra.gmra.mxu0 %vm52_vm1, %v727_v28  ;;  %1967 = vmatmul.msk.f32.vlgmr.msra.gmra.mxu1 %vm52_vm1, %v727_v28 }
 0x101   :  { %1970 = vmatmul.msk.f32.vlgmr.msra.gmra.mxu2 %vm52_vm1, %v727_v28  ;;  %1972 = vmatmul.msk.f32.vlgmr.msra.gmra.mxu3 %vm52_vm1, %v727_v28 }
 0x102   :  { %1985 = vmatpush.msk.msra.mxu0 %vm56_vm0, %v2384_v17  ;;  %1988 = vmatpush.msk.msra.mxu1 %vm56_vm0, %v2389_v18 }
 0x103   :  { %1993 = vmatpush.msk.msra.mxu3 %vm56_vm0, %v2394_v19  ;;  %1991 = vmatpush.msk.msra.mxu2 %vm56_vm0, %v2410_v21 }
 0x17d   :  { %v748_v58 = vpop.f32.mrf.mxu0  ;;  %v788_v20 = vpop.f32.mrf.mxu1 }
 0x17e   :  { %v751_v41 = vadd.f32 %v748_v58, %v2547_v23  ;;  %v791_v42 = vadd.f32 %v788_v20, %v2550_v24 }
 0x180   :  { %v1965_v62 = vmul.f32 -1.442695, %v751_v41  ;;  %v1968_v29 = vmul.f32 -1.442695, %v791_v42 }
 0x182   :  { %2090 = vpow2.f32 %v1965_v62 }
 0x183   :  { %2092 = vpow2.f32 %v1968_v29 }
 0x184   :  { %v850_v1 = vpop.f32.mrf.mxu3  ;;  %v828_v6 = vpop.f32.mrf.mxu2 }
 0x185   :  { %v853_v26 = vadd.f32 %v850_v1, %v2556_v38  ;;  %v831_v24 = vadd.f32 %v828_v6, %v2553_v37 }
 0x187   :  { %v1973_v9 = vmul.f32 -1.442695, %v853_v26 }
 0x188   :  { %v2091_v36 = vpop.eup %2090 }
 0x189   :  { %v2093_v54 = vpop.eup %2092  ;;  %v755_v13 = vadd.f32 1.0, %v2091_v36  ;;  %2094 = vpow2.f32 %v1973_v9 }
 0x18a   :  { %v795_v22 = vadd.f32 1.0, %v2093_v54 }
 0x18b   :  { %2096 = vrcp.f32 %v755_v13  ;;  %v767_v46 = vand.u32 2147483648, %v755_v13  ;;  %v765_v57 = vand.u32 2147483647, %v755_v13  ;;  %vm761_vm14 = vweird.f32 %v755_v13 }
 0x18c   :  { %2098 = vrcp.f32 %v795_v22  ;;  %v807_v25 = vand.u32 2147483648, %v795_v22  ;;  %v805_v10 = vand.u32 2147483647, %v795_v22  ;;  %vm801_vm15 = vweird.f32 %v795_v22 }
 0x18d   :  { %v768_v37 = vor.u32 1.1754944e-38, %v767_v46  ;;  %vm766_vm4 = vcmp.eq.f32.partialorder %v765_v57, 8.507059e+37 }
 0x18e   :  { %v808_v58 = vor.u32 1.1754944e-38, %v807_v25  ;;  %vm806_vm5 = vcmp.eq.f32.partialorder %v805_v10, 8.507059e+37 }
 0x18f   :  { %v2095_v31 = vpop.eup %2094 }
 0x190   :  { %v857_v23 = vadd.f32 1.0, %v2095_v31 }
 0x191   :  { %v2097_v27 = vpop.eup %2096 }
 0x192   :  { %v2099_v32 = vpop.eup %2098  ;;  %v757_v2 = vmul.f32 %v2097_v27, %v755_v13  ;;  %2100 = vrcp.f32 %v857_v23  ;;  %vm762_vm12 = vweird.f32 %v2097_v27  ;;  %vm863_vm7 = vweird.f32 %v857_v23 }
 0x193   :  { %v797_v61 = vmul.f32 %v2099_v32, %v795_v22  ;;  %2102 = vtanh.f32 %v831_v24  ;;  %vm802_vm13 = vweird.f32 %v2099_v32  ;;  %vm763_vm2 = vmor %vm761_vm14, %vm762_vm12  ;;  %v869_v22 = vand.u32 2147483648, %v857_v23 }
 0x194   :  { %v758_v45 = vsub.f32 1.0, %v757_v2  ;;  %vm803_vm3 = vmor %vm801_vm15, %vm802_vm13  ;;  %v867_v6 = vand.u32 2147483647, %v857_v23 }
 0x195   :  { %v798_v38 = vsub.f32 1.0, %v797_v61 }
 0x196   :  { %v759_v50 = vmul.f32 %v2097_v27, %v758_v45  ;;  %vm868_vm9 = vcmp.eq.f32.partialorder %v867_v6, 8.507059e+37 }
 0x197   :  { %v799_v35 = vmul.f32 %v2099_v32, %v798_v38 }
 0x198   :  { %v2101_v5 = vpop.eup %2100  ;;  %v760_v53 = vadd.f32 %v2097_v27, %v759_v50 }
 0x199   :  { %v800_v30 = vadd.f32 %v2099_v32, %v799_v35  ;;  %v859_v28 = vmul.f32 %v2101_v5, %v857_v23  ;;  %v2103_v41 = vpop.eup %2102  ;;  %vm864_vm6 = vweird.f32 %v2101_v5 }
 0x19a   :  { %v764_v20 = vsel %vm763_vm2, %v2097_v27, %v760_v53  ;;  %vm865_vm8 = vmor %vm863_vm7, %vm864_vm6  ;;  %v870_v27 = vor.u32 1.1754944e-38, %v869_v22 }
 0x19b   :  { %v769_v42 = vsel %vm766_vm4, %v768_v37, %v764_v20  ;;  %v804_v62 = vsel %vm803_vm3, %v2099_v32, %v800_v30  ;;  %v860_v29 = vsub.f32 1.0, %v859_v28 }
 0x19c   :  { %v809_v1 = vsel %vm806_vm5, %v808_v58, %v804_v62  ;;  %v874_v26 = vmul.f32 %v2103_v41, %v769_v42 }
 0x19d   :  { %v873_v9 = vmul.f32 %v809_v1, %v2622_v49  ;;  %v861_v36 = vmul.f32 %v2101_v5, %v860_v29 }
 0x19f   :  { %v2645_v54 = vadd.f32 %v874_v26, %v873_v9  ;;  %v862_v13 = vadd.f32 %v2101_v5, %v861_v36 }
 0x1a1   :  { %2104 = vtanh.f32 %v2645_v54  ;;  %v866_v31 = vsel %vm865_vm8, %v2101_v5, %v862_v13 }
 0x1a2   :  { %v871_v32 = vsel %vm868_vm9, %v870_v27, %v866_v31 }
 0x1a7   :  { %v2105_v24 = vpop.eup %2104 }
 0x1a8   :  { %v877_v2 = vmul.f32 %v2105_v24, %v871_v32 }
 0x1aa   :  { %1975 = vmatmul.msk.f32.vlgmr.msrb.gmra.mxu0 %vm52_vm1, %v877_v2  ;;  %1978 = vmatmul.msk.f32.vlgmr.msrb.gmra.mxu1 %vm52_vm1, %v877_v2 }
 0x1ab   :  { %1981 = vmatmul.msk.f32.vlgmr.msrb.gmra.mxu2 %vm52_vm1, %v877_v2  ;;  %1983 = vmatmul.msk.f32.vlgmr.msrb.gmra.mxu3 %vm52_vm1, %v877_v2 }
 0x1ac   :  { %1996 = vmatpush.msk.msrb.mxu0 %vm56_vm0, %v2384_v17  ;;  %1999 = vmatpush.msk.msrb.mxu1 %vm56_vm0, %v2389_v18 }
 0x1ad   :  { %2004 = vmatpush.msk.msrb.mxu3 %vm56_vm0, %v2394_v19  ;;  %2002 = vmatpush.msk.msrb.mxu2 %vm56_vm0, %v2410_v21 }
 0x227   :  { %v898_v49 = vpop.f32.mrf.mxu0  ;;  %v938_v23 = vpop.f32.mrf.mxu1 }
 0x228   :  { %v901_v61 = vadd.f32 %v898_v49, %v2535_v11  ;;  %v941_v45 = vadd.f32 %v938_v23, %v2538_v12 }
 0x22a   :  { %v1976_v38 = vmul.f32 -1.442695, %v901_v61  ;;  %v1979_v46 = vmul.f32 -1.442695, %v941_v45 }
 0x22c   :  { %2106 = vpow2.f32 %v1976_v38 }
 0x22d   :  { %2108 = vpow2.f32 %v1979_v46 }
 0x22e   :  { %v1000_v25 = vpop.f32.mrf.mxu3  ;;  %v978_v37 = vpop.f32.mrf.mxu2 }
 0x22f   :  { %v1003_v50 = vadd.f32 %v1000_v25, %v2544_v16  ;;  %v981_v12 = vadd.f32 %v978_v37, %v2541_v15 }
 0x231   :  { %v1984_v57 = vmul.f32 -1.442695, %v1003_v50 }
 0x232   :  { %v2107_v35 = vpop.eup %2106 }
 0x233   :  { %v2109_v10 = vpop.eup %2108  ;;  %v905_v5 = vadd.f32 1.0, %v2107_v35  ;;  %2110 = vpow2.f32 %v1984_v57 }
 0x234   :  { %v945_v53 = vadd.f32 1.0, %v2109_v10 }
 0x235   :  { %2112 = vrcp.f32 %v905_v5  ;;  %v917_v62 = vand.u32 2147483648, %v905_v5  ;;  %v915_v26 = vand.u32 2147483647, %v905_v5  ;;  %vm911_vm12 = vweird.f32 %v905_v5 }
 0x236   :  { %2114 = vrcp.f32 %v945_v53  ;;  %v957_v29 = vand.u32 2147483648, %v945_v53  ;;  %v955_v36 = vand.u32 2147483647, %v945_v53  ;;  %vm951_vm13 = vweird.f32 %v945_v53 }
 0x237   :  { %v918_v15 = vor.u32 1.1754944e-38, %v917_v62  ;;  %vm916_vm2 = vcmp.eq.f32.partialorder %v915_v26, 8.507059e+37 }
 0x238   :  { %v958_v27 = vor.u32 1.1754944e-38, %v957_v29  ;;  %vm956_vm3 = vcmp.eq.f32.partialorder %v955_v36, 8.507059e+37 }
 0x239   :  { %v2111_v30 = vpop.eup %2110 }
 0x23a   :  { %v1007_v11 = vadd.f32 1.0, %v2111_v30 }
 0x23b   :  { %v2113_v28 = vpop.eup %2112 }
 0x23c   :  { %v2115_v58 = vpop.eup %2114  ;;  %v907_v20 = vmul.f32 %v2113_v28, %v905_v5  ;;  %2116 = vrcp.f32 %v1007_v11  ;;  %vm912_vm10 = vweird.f32 %v2113_v28  ;;  %v1019_v57 = vand.u32 2147483648, %v1007_v11 }
 0x23d   :  { %v947_v41 = vmul.f32 %v2115_v58, %v945_v53  ;;  %2118 = vtanh.f32 %v981_v12  ;;  %vm952_vm11 = vweird.f32 %v2115_v58  ;;  %vm913_vm14 = vmor %vm911_vm12, %vm912_vm10  ;;  %vm1013_vm5 = vweird.f32 %v1007_v11 }
 0x23e   :  { %v908_v42 = vsub.f32 1.0, %v907_v20  ;;  %vm953_vm15 = vmor %vm951_vm13, %vm952_vm11  ;;  %v1017_v35 = vand.u32 2147483647, %v1007_v11  ;;  %v1020_v5 = vor.u32 1.1754944e-38, %v1019_v57 }
 0x23f   :  { %v948_v16 = vsub.f32 1.0, %v947_v41 }
 0x240   :  { %v909_v1 = vmul.f32 %v2113_v28, %v908_v42  ;;  %vm1018_vm7 = vcmp.eq.f32.partialorder %v1017_v35, 8.507059e+37 }
 0x241   :  { %v949_v9 = vmul.f32 %v2115_v58, %v948_v16 }
 0x242   :  { %v2117_v13 = vpop.eup %2116  ;;  %v910_v22 = vadd.f32 %v2113_v28, %v909_v1 }
 0x243   :  { %v950_v6 = vadd.f32 %v2115_v58, %v949_v9  ;;  %v1009_v31 = vmul.f32 %v2117_v13, %v1007_v11  ;;  %v2119_v32 = vpop.eup %2118  ;;  %vm1014_vm4 = vweird.f32 %v2117_v13 }
 0x244   :  { %v914_v24 = vsel %vm913_vm14, %v2113_v28, %v910_v22  ;;  %vm1015_vm6 = vmor %vm1013_vm5, %vm1014_vm4 }
 0x245   :  { %v919_v2 = vsel %vm916_vm2, %v918_v15, %v914_v24  ;;  %v954_v49 = vsel %vm953_vm15, %v2115_v58, %v950_v6  ;;  %v1010_v23 = vsub.f32 1.0, %v1009_v31 }
 0x246   :  { %v959_v61 = vsel %vm956_vm3, %v958_v27, %v954_v49  ;;  %v1024_v45 = vmul.f32 %v2119_v32, %v919_v2 }
 0x247   :  { %v1023_v38 = vmul.f32 %v959_v61, %v2645_v54  ;;  %v1011_v46 = vmul.f32 %v2117_v13, %v1010_v23 }
 0x249   :  { %v2665_v25 = vadd.f32 %v1024_v45, %v1023_v38  ;;  %v1012_v50 = vadd.f32 %v2117_v13, %v1011_v46 }
 0x24b   :  { %2120 = vtanh.f32 %v2665_v25  ;;  %v1016_v10 = vsel %vm1015_vm6, %v2117_v13, %v1012_v50 }
 0x24c   :  { %v1021_v37 = vsel %vm1018_vm7, %v1020_v5, %v1016_v10 }
 0x251   :  { %v2121_v53 = vpop.eup %2120 }
 0x252   :  { %v1027_v30 = vmul.f32 %v2121_v53, %v1021_v37 }
 0x254   :  { %1986 = vmatmul.msk.f32.vlgmr.msra.gmra.mxu0 %vm52_vm1, %v1027_v30  ;;  %1989 = vmatmul.msk.f32.vlgmr.msra.gmra.mxu1 %vm52_vm1, %v1027_v30 }
 0x255   :  { %1992 = vmatmul.msk.f32.vlgmr.msra.gmra.mxu2 %vm52_vm1, %v1027_v30  ;;  %1994 = vmatmul.msk.f32.vlgmr.msra.gmra.mxu3 %vm52_vm1, %v1027_v30 }
 0x256   :  { %2007 = vmatpush.msk.msra.mxu0 %vm56_vm0, %v2384_v17  ;;  %2010 = vmatpush.msk.msra.mxu1 %vm56_vm0, %v2389_v18 }
 0x257   :  { %2015 = vmatpush.msk.msra.mxu3 %vm56_vm0, %v2394_v19  ;;  %2013 = vmatpush.msk.msra.mxu2 %vm56_vm0, %v2410_v21 }
 0x2d1   :  { %v1048_v54 = vpop.f32.mrf.mxu0  ;;  %v1088_v11 = vpop.f32.mrf.mxu1 }
 0x2d2   :  { %v1051_v28 = vadd.f32 %v1048_v54, %v2523_v3  ;;  %v1091_v12 = vadd.f32 %v1088_v11, %v2526_v4 }
 0x2d4   :  { %v1987_v58 = vmul.f32 -1.442695, %v1051_v28  ;;  %v1990_v20 = vmul.f32 -1.442695, %v1091_v12 }
 0x2d6   :  { %2122 = vpow2.f32 %v1987_v58 }
 0x2d7   :  { %2124 = vpow2.f32 %v1990_v20 }
 0x2d8   :  { %v1150_v17 = vpop.f32.mrf.mxu3  ;;  %v1128_v29 = vpop.f32.mrf.mxu2 }
 0x2d9   :  { %v1153_v41 = vadd.f32 %v1150_v17, %v2532_v8  ;;  %v1131_v4 = vadd.f32 %v1128_v29, %v2529_v7 }
 0x2db   :  { %v1995_v18 = vmul.f32 -1.442695, %v1153_v41 }
 0x2dc   :  { %v2123_v42 = vpop.eup %2122 }
 0x2dd   :  { %v2125_v16 = vpop.eup %2124  ;;  %v1055_v19 = vadd.f32 1.0, %v2123_v42  ;;  %2126 = vpow2.f32 %v1995_v18  ;;  %v2702_v18 = vld [vmem:[%s2794_s5 + $0x4] sm:$0xf]  ;;  %v2709_v42 = vld [vmem:[%s2794_s5 + $0xc] sm:$0xf] }
 0x2de   :  { %v1095_v62 = vadd.f32 1.0, %v2125_v16 }
 0x2df   :  { %2128 = vrcp.f32 %v1055_v19  ;;  %v1067_v15 = vand.u32 2147483648, %v1055_v19  ;;  %v1065_v27 = vand.u32 2147483647, %v1055_v19  ;;  %vm1061_vm10 = vweird.f32 %v1055_v19 }
 0x2e0   :  { %2130 = vrcp.f32 %v1095_v62  ;;  %v1107_v6 = vand.u32 2147483648, %v1095_v62  ;;  %v1105_v32 = vand.u32 2147483647, %v1095_v62  ;;  %vm1101_vm11 = vweird.f32 %v1095_v62 }
 0x2e1   :  { %v1068_v7 = vor.u32 1.1754944e-38, %v1067_v15  ;;  %vm1066_vm14 = vcmp.eq.f32.partialorder %v1065_v27, 8.507059e+37 }
 0x2e2   :  { %v1108_v45 = vor.u32 1.1754944e-38, %v1107_v6  ;;  %vm1106_vm15 = vcmp.eq.f32.partialorder %v1105_v32, 8.507059e+37 }
 0x2e3   :  { %v2127_v1 = vpop.eup %2126 }
 0x2e4   :  { %v1157_v3 = vadd.f32 1.0, %v2127_v1 }
 0x2e5   :  { %v2129_v26 = vpop.eup %2128 }
 0x2e6   :  { %v2131_v9 = vpop.eup %2130  ;;  %v1057_v36 = vmul.f32 %v2129_v26, %v1055_v19  ;;  %2132 = vrcp.f32 %v1157_v3  ;;  %vm1062_vm8 = vweird.f32 %v2129_v26  ;;  %v1169_v11 = vand.u32 2147483648, %v1157_v3 }
 0x2e7   :  { %v1097_v13 = vmul.f32 %v2131_v9, %v1095_v62  ;;  %2134 = vtanh.f32 %v1131_v4  ;;  %vm1102_vm9 = vweird.f32 %v2131_v9  ;;  %vm1063_vm12 = vmor %vm1061_vm10, %vm1062_vm8  ;;  %vm1163_vm3 = vweird.f32 %v1157_v3 }
 0x2e8   :  { %v1058_v22 = vsub.f32 1.0, %v1057_v36  ;;  %vm1103_vm13 = vmor %vm1101_vm11, %vm1102_vm9  ;;  %v1167_v28 = vand.u32 2147483647, %v1157_v3  ;;  %v1170_v58 = vor.u32 1.1754944e-38, %v1169_v11 }
 0x2e9   :  { %v1098_v8 = vsub.f32 1.0, %v1097_v13 }
 0x2ea   :  { %v1059_v31 = vmul.f32 %v2129_v26, %v1058_v22  ;;  %vm1168_vm5 = vcmp.eq.f32.partialorder %v1167_v28, 8.507059e+37 }
 0x2eb   :  { %v1099_v24 = vmul.f32 %v2131_v9, %v1098_v8 }
 0x2ec   :  { %v2133_v2 = vpop.eup %2132  ;;  %v1060_v49 = vadd.f32 %v2129_v26, %v1059_v31 }
 0x2ed   :  { %v1100_v23 = vadd.f32 %v2131_v9, %v1099_v24  ;;  %v1159_v61 = vmul.f32 %v2133_v2, %v1157_v3  ;;  %v2135_v46 = vpop.eup %2134  ;;  %vm1164_vm2 = vweird.f32 %v2133_v2 }
 0x2ee   :  { %v1064_v38 = vsel %vm1063_vm12, %v2129_v26, %v1060_v49  ;;  %vm1165_vm4 = vmor %vm1163_vm3, %vm1164_vm2 }
 0x2ef   :  { %v1069_v50 = vsel %vm1066_vm14, %v1068_v7, %v1064_v38  ;;  %v1104_v57 = vsel %vm1103_vm13, %v2131_v9, %v1100_v23  ;;  %v1160_v35 = vsub.f32 1.0, %v1159_v61 }
 0x2f0   :  { %v1109_v10 = vsel %vm1106_vm15, %v1108_v45, %v1104_v57  ;;  %v1174_v5 = vmul.f32 %v2135_v46, %v1069_v50 }
 0x2f1   :  { %v1173_v53 = vmul.f32 %v1109_v10, %v2665_v25  ;;  %v1161_v37 = vmul.f32 %v2133_v2, %v1160_v35  ;;  %v2695_v25 = vld [vmem:[%s2794_s5] sm:$0xf] }
 0x2f3   :  { %v2685_v30 = vadd.f32 %v1174_v5, %v1173_v53  ;;  %v1162_v54 = vadd.f32 %v2133_v2, %v1161_v37 }
 0x2f5   :  { %2136 = vtanh.f32 %v2685_v30  ;;  %v1166_v12 = vsel %vm1165_vm4, %v2133_v2, %v1162_v54 }
 0x2f6   :  { %v1171_v17 = vsel %vm1168_vm5, %v1170_v58, %v1166_v12 }
 0x2fb   :  { %v2137_v20 = vpop.eup %2136 }
 0x2fc   :  { %v1177_v41 = vmul.f32 %v2137_v20, %v1171_v17 }
 0x2fe   :  { %1997 = vmatmul.msk.f32.vlgmr.msrb.gmra.mxu0 %vm52_vm1, %v1177_v41  ;;  %2000 = vmatmul.msk.f32.vlgmr.msrb.gmra.mxu1 %vm52_vm1, %v1177_v41 }
 0x2ff   :  { %2003 = vmatmul.msk.f32.vlgmr.msrb.gmra.mxu2 %vm52_vm1, %v1177_v41  ;;  %2005 = vmatmul.msk.f32.vlgmr.msrb.gmra.mxu3 %vm52_vm1, %v1177_v41 }
 0x300   :  { %2018 = vmatpush.msk.msrb.mxu0 %vm56_vm0, %v2695_v25  ;;  %2021 = vmatpush.msk.msrb.mxu1 %vm56_vm0, %v2702_v18 }
 0x301   :  { %2026 = vmatpush.msk.msrb.mxu3 %vm56_vm0, %v2709_v42  ;;  %2024 = vmatpush.msk.msrb.mxu2 %vm56_vm0, %v2410_v21 }
 0x37b   :  { %v1198_v16 = vpop.f32.mrf.mxu0  ;;  %v1238_v19 = vpop.f32.mrf.mxu1 }
 0x37c   :  { %v1201_v62 = vadd.f32 %v1198_v16, %v2511_v59  ;;  %v1241_v29 = vadd.f32 %v1238_v19, %v2514_v60 }
 0x37e   :  { %v1998_v1 = vmul.f32 -1.442695, %v1201_v62  ;;  %v2001_v3 = vmul.f32 -1.442695, %v1241_v29 }
 0x380   :  { %2138 = vpow2.f32 %v1998_v1 }
 0x381   :  { %2140 = vpow2.f32 %v2001_v3 }
 0x382   :  { %v1300_v26 = vpop.f32.mrf.mxu3  ;;  %v1278_v21 = vpop.f32.mrf.mxu2 }
 0x383   :  { %v1303_v4 = vadd.f32 %v1300_v26, %v2520_v0  ;;  %v1281_v60 = vadd.f32 %v1278_v21, %v2517_v63 }
 0x385   :  { %v2006_v9 = vmul.f32 -1.442695, %v1303_v4 }
 0x386   :  { %v2139_v36 = vpop.eup %2138 }
 0x387   :  { %v2141_v13 = vpop.eup %2140  ;;  %v1205_v22 = vadd.f32 1.0, %v2139_v36  ;;  %2142 = vpow2.f32 %v2006_v9 }
 0x388   :  { %v1245_v8 = vadd.f32 1.0, %v2141_v13 }
 0x389   :  { %2144 = vrcp.f32 %v1205_v22  ;;  %v1217_v2 = vand.u32 2147483648, %v1205_v22  ;;  %v1215_v23 = vand.u32 2147483647, %v1205_v22  ;;  %vm1211_vm8 = vweird.f32 %v1205_v22 }
 0x38a   :  { %2146 = vrcp.f32 %v1245_v8  ;;  %v1257_v49 = vand.u32 2147483648, %v1245_v8  ;;  %v1255_v45 = vand.u32 2147483647, %v1245_v8  ;;  %vm1251_vm9 = vweird.f32 %v1245_v8 }
 0x38b   :  { %v1218_v63 = vor.u32 1.1754944e-38, %v1217_v2  ;;  %vm1216_vm12 = vcmp.eq.f32.partialorder %v1215_v23, 8.507059e+37 }
 0x38c   :  { %v1258_v35 = vor.u32 1.1754944e-38, %v1257_v49  ;;  %vm1256_vm13 = vcmp.eq.f32.partialorder %v1255_v45, 8.507059e+37 }
 0x38d   :  { %v2143_v15 = vpop.eup %2142 }
 0x38e   :  { %v1307_v59 = vadd.f32 1.0, %v2143_v15 }
 0x38f   :  { %v2145_v6 = vpop.eup %2144 }
 0x390   :  { %v2147_v31 = vpop.eup %2146  ;;  %v1207_v27 = vmul.f32 %v2145_v6, %v1205_v22  ;;  %2148 = vrcp.f32 %v1307_v59  ;;  %vm1212_vm6 = vweird.f32 %v2145_v6  ;;  %v1319_v41 = vand.u32 2147483648, %v1307_v59 }
 0x391   :  { %v1247_v24 = vmul.f32 %v2147_v31, %v1245_v8  ;;  %2150 = vtanh.f32 %v1281_v60  ;;  %vm1252_vm7 = vweird.f32 %v2147_v31  ;;  %vm1213_vm10 = vmor %vm1211_vm8, %vm1212_vm6  ;;  %vm1313_vm15 = vweird.f32 %v1307_v59 }
 0x392   :  { %v1208_v32 = vsub.f32 1.0, %v1207_v27  ;;  %vm1253_vm11 = vmor %vm1251_vm9, %vm1252_vm7  ;;  %v1317_v16 = vand.u32 2147483647, %v1307_v59  ;;  %v1320_v62 = vor.u32 1.1754944e-38, %v1319_v41 }
 0x393   :  { %v1248_v0 = vsub.f32 1.0, %v1247_v24 }
 0x394   :  { %v1209_v7 = vmul.f32 %v2145_v6, %v1208_v32  ;;  %vm1318_vm3 = vcmp.eq.f32.partialorder %v1317_v16, 8.507059e+37 }
 0x395   :  { %v1249_v61 = vmul.f32 %v2147_v31, %v1248_v0 }
 0x396   :  { %v2149_v38 = vpop.eup %2148  ;;  %v1210_v46 = vadd.f32 %v2145_v6, %v1209_v7 }
 0x397   :  { %v1250_v50 = vadd.f32 %v2147_v31, %v1249_v61  ;;  %v1309_v57 = vmul.f32 %v2149_v38, %v1307_v59  ;;  %v2151_v5 = vpop.eup %2150  ;;  %vm1314_vm14 = vweird.f32 %v2149_v38 }
 0x398   :  { %v1214_v10 = vsel %vm1213_vm10, %v2145_v6, %v1210_v46  ;;  %vm1315_vm2 = vmor %vm1313_vm15, %vm1314_vm14 }
 0x399   :  { %v1219_v53 = vsel %vm1216_vm12, %v1218_v63, %v1214_v10  ;;  %v1254_v37 = vsel %vm1253_vm11, %v2147_v31, %v1250_v50  ;;  %v1310_v54 = vsub.f32 1.0, %v1309_v57 }
 0x39a   :  { %v1259_v11 = vsel %vm1256_vm13, %v1258_v35, %v1254_v37  ;;  %v1324_v28 = vmul.f32 %v2151_v5, %v1219_v53 }
 0x39b   :  { %v1323_v12 = vmul.f32 %v1259_v11, %v2685_v30  ;;  %v1311_v58 = vmul.f32 %v2149_v38, %v1310_v54  ;;  %v2205_v30 = vld [vmem:[%s2794_s5 + $0x8] sm:$0xf] }
 0x39d   :  { %v2720_v20 = vadd.f32 %v1324_v28, %v1323_v12  ;;  %v1312_v17 = vadd.f32 %v2149_v38, %v1311_v58 }
 0x39f   :  { %2152 = vtanh.f32 %v2720_v20  ;;  %v1316_v19 = vsel %vm1315_vm2, %v2149_v38, %v1312_v17 }
 0x3a0   :  { %v1321_v1 = vsel %vm1318_vm3, %v1320_v62, %v1316_v19 }
 0x3a5   :  { %v2153_v29 = vpop.eup %2152 }
 0x3a6   :  { %v1327_v3 = vmul.f32 %v2153_v29, %v1321_v1 }
 0x3a8   :  { %2008 = vmatmul.msk.f32.vlgmr.msra.gmra.mxu0 %vm52_vm1, %v1327_v3  ;;  %2011 = vmatmul.msk.f32.vlgmr.msra.gmra.mxu1 %vm52_vm1, %v1327_v3 }
 0x3a9   :  { %2014 = vmatmul.msk.f32.vlgmr.msra.gmra.mxu2 %vm52_vm1, %v1327_v3  ;;  %2016 = vmatmul.msk.f32.vlgmr.msra.gmra.mxu3 %vm52_vm1, %v1327_v3 }
 0x3aa   :  { %2029 = vmatpush.msk.msra.mxu0 %vm56_vm0, %v2695_v25  ;;  %2032 = vmatpush.msk.msra.mxu1 %vm56_vm0, %v2702_v18 }
 0x3ab   :  { %2037 = vmatpush.msk.msra.mxu3 %vm56_vm0, %v2709_v42  ;;  %2035 = vmatpush.msk.msra.mxu2 %vm56_vm0, %v2205_v30 }
 0x425   :  { %v1348_v26 = vpop.f32.mrf.mxu0  ;;  %v1388_v4 = vpop.f32.mrf.mxu1 }
 0x426   :  { %v1351_v9 = vadd.f32 %v1348_v26, %v2499_v51  ;;  %v1391_v36 = vadd.f32 %v1388_v4, %v2502_v52 }
 0x428   :  { %v2009_v13 = vmul.f32 -1.442695, %v1351_v9  ;;  %v2012_v25 = vmul.f32 -1.442695, %v1391_v36 }
 0x42a   :  { %2154 = vpow2.f32 %v2009_v13 }
 0x42b   :  { %2156 = vpow2.f32 %v2012_v25 }
 0x42c   :  { %v1450_v18 = vpop.f32.mrf.mxu3  ;;  %v1428_v6 = vpop.f32.mrf.mxu2 }
 0x42d   :  { %v1453_v22 = vadd.f32 %v1450_v18, %v2508_v56  ;;  %v1431_v52 = vadd.f32 %v1428_v6, %v2505_v55 }
 0x42f   :  { %v2017_v42 = vmul.f32 -1.442695, %v1453_v22 }
 0x430   :  { %v2155_v8 = vpop.eup %2154 }
 0x431   :  { %v2157_v21 = vpop.eup %2156  ;;  %v1355_v15 = vadd.f32 1.0, %v2155_v8  ;;  %2158 = vpow2.f32 %v2017_v42 }
 0x432   :  { %v1395_v59 = vadd.f32 1.0, %v2157_v21 }
 0x433   :  { %2160 = vrcp.f32 %v1355_v15  ;;  %v1367_v2 = vand.u32 2147483648, %v1355_v15  ;;  %v1365_v23 = vand.u32 2147483647, %v1355_v15  ;;  %vm1361_vm6 = vweird.f32 %v1355_v15 }
 0x434   :  { %2162 = vrcp.f32 %v1395_v59  ;;  %v1407_v49 = vand.u32 2147483648, %v1395_v59  ;;  %v1405_v45 = vand.u32 2147483647, %v1395_v59  ;;  %vm1401_vm7 = vweird.f32 %v1395_v59 }
 0x435   :  { %v1368_v55 = vor.u32 1.1754944e-38, %v1367_v2  ;;  %vm1366_vm10 = vcmp.eq.f32.partialorder %v1365_v23, 8.507059e+37 }
 0x436   :  { %v1408_v57 = vor.u32 1.1754944e-38, %v1407_v49  ;;  %vm1406_vm11 = vcmp.eq.f32.partialorder %v1405_v45, 8.507059e+37 }
 0x437   :  { %v2159_v60 = vpop.eup %2158 }
 0x438   :  { %v1457_v51 = vadd.f32 1.0, %v2159_v60 }
 0x439   :  { %v2161_v31 = vpop.eup %2160 }
 0x43a   :  { %v2163_v27 = vpop.eup %2162  ;;  %v1357_v24 = vmul.f32 %v2161_v31, %v1355_v15  ;;  %2164 = vrcp.f32 %v1457_v51  ;;  %vm1362_vm4 = vweird.f32 %v2161_v31  ;;  %v1469_v41 = vand.u32 2147483648, %v1457_v51 }
 0x43b   :  { %v1397_v32 = vmul.f32 %v2163_v27, %v1395_v59  ;;  %2166 = vtanh.f32 %v1431_v52  ;;  %vm1402_vm5 = vweird.f32 %v2163_v27  ;;  %vm1363_vm8 = vmor %vm1361_vm6, %vm1362_vm4  ;;  %vm1463_vm13 = vweird.f32 %v1457_v51 }
 0x43c   :  { %v1358_v0 = vsub.f32 1.0, %v1357_v24  ;;  %vm1403_vm9 = vmor %vm1401_vm7, %vm1402_vm5  ;;  %v1467_v16 = vand.u32 2147483647, %v1457_v51  ;;  %v1470_v62 = vor.u32 1.1754944e-38, %v1469_v41 }
 0x43d   :  { %v1398_v56 = vsub.f32 1.0, %v1397_v32 }
 0x43e   :  { %v1359_v7 = vmul.f32 %v2161_v31, %v1358_v0  ;;  %vm1468_vm15 = vcmp.eq.f32.partialorder %v1467_v16, 8.507059e+37 }
 0x43f   :  { %v1399_v61 = vmul.f32 %v2163_v27, %v1398_v56 }
 0x440   :  { %v2165_v38 = vpop.eup %2164  ;;  %v1360_v46 = vadd.f32 %v2161_v31, %v1359_v7 }
 0x441   :  { %v1400_v63 = vadd.f32 %v2163_v27, %v1399_v61  ;;  %v1459_v50 = vmul.f32 %v2165_v38, %v1457_v51  ;;  %v2167_v10 = vpop.eup %2166  ;;  %vm1464_vm12 = vweird.f32 %v2165_v38 }
 0x442   :  { %v1364_v35 = vsel %vm1363_vm8, %v2161_v31, %v1360_v46  ;;  %vm1465_vm14 = vmor %vm1463_vm13, %vm1464_vm12 }
 0x443   :  { %v1369_v5 = vsel %vm1366_vm10, %v1368_v55, %v1364_v35  ;;  %v1404_v53 = vsel %vm1403_vm9, %v2163_v27, %v1400_v63  ;;  %v1460_v37 = vsub.f32 1.0, %v1459_v50 }
 0x444   :  { %v1409_v54 = vsel %vm1406_vm11, %v1408_v57, %v1404_v53  ;;  %v1474_v11 = vmul.f32 %v2167_v10, %v1369_v5 }
 0x445   :  { %v1473_v28 = vmul.f32 %v1409_v54, %v2720_v20  ;;  %v1461_v12 = vmul.f32 %v2165_v38, %v1460_v37 }
 0x447   :  { %v2742_v58 = vadd.f32 %v1474_v11, %v1473_v28  ;;  %v1462_v17 = vadd.f32 %v2165_v38, %v1461_v12 }
 0x449   :  { %2168 = vtanh.f32 %v2742_v58  ;;  %v1466_v19 = vsel %vm1465_vm14, %v2165_v38, %v1462_v17 }
 0x44a   :  { %v1471_v1 = vsel %vm1468_vm15, %v1470_v62, %v1466_v19 }
 0x44f   :  { %v2169_v29 = vpop.eup %2168 }
 0x450   :  { %v1477_v3 = vmul.f32 %v2169_v29, %v1471_v1 }
 0x452   :  { %2019 = vmatmul.msk.f32.vlgmr.msrb.gmra.mxu0 %vm52_vm1, %v1477_v3  ;;  %2022 = vmatmul.msk.f32.vlgmr.msrb.gmra.mxu1 %vm52_vm1, %v1477_v3 }
 0x453   :  { %2025 = vmatmul.msk.f32.vlgmr.msrb.gmra.mxu2 %vm52_vm1, %v1477_v3  ;;  %2027 = vmatmul.msk.f32.vlgmr.msrb.gmra.mxu3 %vm52_vm1, %v1477_v3 }
 0x4cf   :  { %v1498_v20 = vpop.f32.mrf.mxu0  ;;  %v1538_v30 = vpop.f32.mrf.mxu1 }
 0x4d0   :  { %v1501_v26 = vadd.f32 %v1498_v20, %v2487_v43  ;;  %v1541_v4 = vadd.f32 %v1538_v30, %v2490_v44  ;;  %v1778_v43 = vld [vmem:[%s2796_s7] sm:$0xf]  ;;  %v2040_v30 = vld [vmem:[%s2796_s7 + $0x4] sm:$0xf] }
 0x4d1   :  { %2043 = vmatpush.msk.msrb.mxu1 %vm56_vm0, %v1778_v43  ;;  %2041 = vmatpush.msk.msrb.mxu0 %vm56_vm0, %v2040_v30 }
 0x4d2   :  { %v2020_v9 = vmul.f32 -1.442695, %v1501_v26  ;;  %v2023_v36 = vmul.f32 -1.442695, %v1541_v4 }
 0x4d4   :  { %2170 = vpow2.f32 %v2020_v9 }
 0x4d5   :  { %2172 = vpow2.f32 %v2023_v36 }
 0x4d6   :  { %v1600_v13 = vpop.f32.mrf.mxu3  ;;  %v1578_v44 = vpop.f32.mrf.mxu2 }
 0x4d7   :  { %v1603_v25 = vadd.f32 %v1600_v13, %v2496_v48  ;;  %v1581_v48 = vadd.f32 %v1578_v44, %v2493_v47 }
 0x4d9   :  { %v2028_v18 = vmul.f32 -1.442695, %v1603_v25 }
 0x4da   :  { %v2171_v22 = vpop.eup %2170 }
 0x4db   :  { %v2173_v42 = vpop.eup %2172  ;;  %v1505_v8 = vadd.f32 1.0, %v2171_v22  ;;  %2174 = vpow2.f32 %v2028_v18 }
 0x4dc   :  { %v1545_v21 = vadd.f32 1.0, %v2173_v42 }
 0x4dd   :  { %2176 = vrcp.f32 %v1505_v8  ;;  %v1517_v24 = vand.u32 2147483648, %v1505_v8  ;;  %v1515_v56 = vand.u32 2147483647, %v1505_v8  ;;  %vm1511_vm4 = vweird.f32 %v1505_v8 }
 0x4de   :  { %2178 = vrcp.f32 %v1545_v21  ;;  %v1557_v32 = vand.u32 2147483648, %v1545_v21  ;;  %v1555_v49 = vand.u32 2147483647, %v1545_v21  ;;  %vm1551_vm5 = vweird.f32 %v1545_v21 }
 0x4df   :  { %v1518_v47 = vor.u32 1.1754944e-38, %v1517_v24  ;;  %vm1516_vm8 = vcmp.eq.f32.partialorder %v1515_v56, 8.507059e+37 }
 0x4e0   :  { %v1558_v38 = vor.u32 1.1754944e-38, %v1557_v32  ;;  %vm1556_vm9 = vcmp.eq.f32.partialorder %v1555_v49, 8.507059e+37 }
 0x4e1   :  { %v2175_v15 = vpop.eup %2174 }
 0x4e2   :  { %v1607_v59 = vadd.f32 1.0, %v2175_v15 }
 0x4e3   :  { %v2177_v6 = vpop.eup %2176 }
 0x4e4   :  { %v2179_v60 = vpop.eup %2178  ;;  %v1507_v51 = vmul.f32 %v2177_v6, %v1505_v8  ;;  %2180 = vrcp.f32 %v1607_v59  ;;  %vm1512_vm2 = vweird.f32 %v2177_v6  ;;  %v1619_v11 = vand.u32 2147483648, %v1607_v59 }
 0x4e5   :  { %v1547_v31 = vmul.f32 %v2179_v60, %v1545_v21  ;;  %2182 = vtanh.f32 %v1581_v48  ;;  %vm1552_vm3 = vweird.f32 %v2179_v60  ;;  %vm1513_vm6 = vmor %vm1511_vm4, %vm1512_vm2  ;;  %vm1613_vm11 = vweird.f32 %v1607_v59 }
 0x4e6   :  { %v1508_v52 = vsub.f32 1.0, %v1507_v51  ;;  %vm1553_vm7 = vmor %vm1551_vm5, %vm1552_vm3  ;;  %v1617_v28 = vand.u32 2147483647, %v1607_v59  ;;  %v1620_v17 = vor.u32 1.1754944e-38, %v1619_v11 }
 0x4e7   :  { %v1548_v27 = vsub.f32 1.0, %v1547_v31 }
 0x4e8   :  { %v1509_v0 = vmul.f32 %v2177_v6, %v1508_v52  ;;  %vm1618_vm13 = vcmp.eq.f32.partialorder %v1617_v28, 8.507059e+37 }
 0x4e9   :  { %v1549_v2 = vmul.f32 %v2179_v60, %v1548_v27 }
 0x4ea   :  { %v2181_v7 = vpop.eup %2180  ;;  %v1510_v23 = vadd.f32 %v2177_v6, %v1509_v0 }
 0x4eb   :  { %v1550_v61 = vadd.f32 %v2179_v60, %v1549_v2  ;;  %v1609_v45 = vmul.f32 %v2181_v7, %v1607_v59  ;;  %v2183_v55 = vpop.eup %2182  ;;  %vm1614_vm10 = vweird.f32 %v2181_v7 }
 0x4ec   :  { %v1514_v46 = vsel %vm1513_vm6, %v2177_v6, %v1510_v23  ;;  %vm1615_vm12 = vmor %vm1613_vm11, %vm1614_vm10 }
 0x4ed   :  { %v1519_v63 = vsel %vm1516_vm8, %v1518_v47, %v1514_v46  ;;  %v1554_v50 = vsel %vm1553_vm7, %v2179_v60, %v1550_v61  ;;  %v1610_v57 = vsub.f32 1.0, %v1609_v45 }
 0x4ee   :  { %v1559_v35 = vsel %vm1556_vm9, %v1558_v38, %v1554_v50  ;;  %v1624_v10 = vmul.f32 %v2183_v55, %v1519_v63 }
 0x4ef   :  { %v1623_v5 = vmul.f32 %v1559_v35, %v2742_v58  ;;  %v1611_v53 = vmul.f32 %v2181_v7, %v1610_v57 }
 0x4f1   :  { %v2758_v37 = vadd.f32 %v1624_v10, %v1623_v5  ;;  %v1612_v54 = vadd.f32 %v2181_v7, %v1611_v53  ;;  %v1841_v53 = vld [vmem:[%s2798_s9] sm:$0xff]  ;;  %s1876_s9 = sshll.u32 %s2233_s27, 4  ;;  %s1877_s9 = int_to_ptr.vmem [resolvable:$true] %s1876_s9 }
 0x4f2   :  { %1865 = vmatpush.msrb.mxu2 %v1841_v53 }
 0x4f3   :  { %2184 = vtanh.f32 %v2758_v37  ;;  %v1616_v12 = vsel %vm1615_vm12, %v2181_v7, %v1612_v54  ;;  %vm1846_vm12 = vcmask 64512  }
 0x4f4   :  { %v1621_v16 = vsel %vm1618_vm13, %v1620_v17, %v1616_v12 }
 0x4f9   :  { %v2185_v41 = vpop.eup %2184 }
 0x4fa   :  { %v1627_v19 = vmul.f32 %v2185_v41, %v1621_v16  ;;  %v2057_v16 = vld [vmem:[%s2799_s10] ss:$0 sm:$0xff] }
 0x4fc   :  { %2030 = vmatmul.msk.f32.vlgmr.msra.gmra.mxu0 %vm52_vm1, %v1627_v19  ;;  %2033 = vmatmul.msk.f32.vlgmr.msra.gmra.mxu1 %vm52_vm1, %v1627_v19 }
 0x4fd   :  { %2036 = vmatmul.msk.f32.vlgmr.msra.gmra.mxu2 %vm52_vm1, %v1627_v19  ;;  %2038 = vmatmul.msk.f32.vlgmr.msra.gmra.mxu3 %vm52_vm1, %v1627_v19 }
 0x504   :  { %2044 = vmatmul.msk.f32.vlgmr.msrb.gmra.mxu1 %vm52_vm1, %v2620_v14 }
 0x579   :  { %v1648_v58 = vpop.f32.mrf.mxu0  ;;  %v1688_v62 = vpop.f32.mrf.mxu1 }
 0x57a   :  { %v1651_v29 = vadd.f32 %v1648_v58, %v2465_v33  ;;  %v1691_v1 = vadd.f32 %v1688_v62, %v2468_v34 }
 0x57c   :  { %v2031_v3 = vmul.f32 -1.442695, %v1651_v29  ;;  %v2034_v20 = vmul.f32 -1.442695, %v1691_v1 }
 0x57e   :  { %2186 = vpow2.f32 %v2031_v3 }
 0x57f   :  { %2188 = vpow2.f32 %v2034_v20 }
 0x580   :  { %v1750_v26 = vpop.f32.mrf.mxu3  ;;  %v1728_v34 = vpop.f32.mrf.mxu2 }
 0x581   :  { %v1753_v4 = vadd.f32 %v1750_v26, %v2484_v40  ;;  %v1731_v42 = vadd.f32 %v1728_v34, %v2481_v39  ;;  %v1830_v54 = vpop.f32.mrf.mxu1 }
 0x583   :  { %v2039_v14 = vmul.f32 -1.442695, %v1753_v4 }
 0x584   :  { %v2187_v9 = vpop.eup %2186 }
 0x585   :  { %v2189_v36 = vpop.eup %2188  ;;  %v1655_v13 = vadd.f32 1.0, %v2187_v9  ;;  %2190 = vpow2.f32 %v2039_v14 }
 0x586   :  { %v1695_v33 = vadd.f32 1.0, %v2189_v36 }
 0x587   :  { %2192 = vrcp.f32 %v1655_v13  ;;  %v1667_v15 = vand.u32 2147483648, %v1655_v13  ;;  %v1665_v48 = vand.u32 2147483647, %v1655_v13  ;;  %vm1661_vm15 = vweird.f32 %v1655_v13 }
 0x588   :  { %2194 = vrcp.f32 %v1695_v33  ;;  %v1707_v59 = vand.u32 2147483648, %v1695_v33  ;;  %v1705_v51 = vand.u32 2147483647, %v1695_v33  ;;  %vm1701_vm2 = vweird.f32 %v1695_v33 }
 0x589   :  { %v1668_v39 = vor.u32 1.1754944e-38, %v1667_v15  ;;  %vm1666_vm5 = vcmp.eq.f32.partialorder %v1665_v48, 8.507059e+37 }
 0x58a   :  { %v1708_v32 = vor.u32 1.1754944e-38, %v1707_v59  ;;  %vm1706_vm6 = vcmp.eq.f32.partialorder %v1705_v51, 8.507059e+37 }
 0x58b   :  { %v2191_v25 = vpop.eup %2190 }
 0x58c   :  { %v1757_v18 = vadd.f32 1.0, %v2191_v25 }
 0x58d   :  { %v2193_v22 = vpop.eup %2192 }
 0x58e   :  { %v2195_v8 = vpop.eup %2194  ;;  %v1657_v21 = vmul.f32 %v2193_v22, %v1655_v13  ;;  %2196 = vrcp.f32 %v1757_v18  ;;  %vm1662_vm0 = vweird.f32 %v2193_v22  ;;  %v1769_v55 = vand.u32 2147483648, %v1757_v18 }
 0x58f   :  { %v1697_v43 = vmul.f32 %v2195_v8, %v1695_v33  ;;  %2198 = vtanh.f32 %v1731_v42  ;;  %vm1702_vm14 = vweird.f32 %v2195_v8  ;;  %vm1663_vm3 = vmor %vm1661_vm15, %vm1662_vm0  ;;  %vm1763_vm8 = vweird.f32 %v1757_v18 }
 0x590   :  { %v1658_v44 = vsub.f32 1.0, %v1657_v21  ;;  %vm1703_vm4 = vmor %vm1701_vm2, %vm1702_vm14  ;;  %v1767_v63 = vand.u32 2147483647, %v1757_v18  ;;  %v1770_v57 = vor.u32 1.1754944e-38, %v1769_v55 }
 0x591   :  { %v1698_v40 = vsub.f32 1.0, %v1697_v43 }
 0x592   :  { %v1659_v6 = vmul.f32 %v2193_v22, %v1658_v44  ;;  %vm1768_vm10 = vcmp.eq.f32.partialorder %v1767_v63, 8.507059e+37 }
 0x593   :  { %v1699_v60 = vmul.f32 %v2195_v8, %v1698_v40 }
 0x594   :  { %v2197_v31 = vpop.eup %2196  ;;  %v1660_v52 = vadd.f32 %v2193_v22, %v1659_v6 }
 0x595   :  { %v1700_v27 = vadd.f32 %v2195_v8, %v1699_v60  ;;  %v1759_v24 = vmul.f32 %v2197_v31, %v1757_v18  ;;  %v2199_v56 = vpop.eup %2198  ;;  %vm1764_vm7 = vweird.f32 %v2197_v31 }
 0x596   :  { %v1664_v0 = vsel %vm1663_vm3, %v2193_v22, %v1660_v52  ;;  %vm1765_vm9 = vmor %vm1763_vm8, %vm1764_vm7 }
 0x597   :  { %v1669_v2 = vsel %vm1666_vm5, %v1668_v39, %v1664_v0  ;;  %v1704_v49 = vsel %vm1703_vm4, %v2195_v8, %v1700_v27  ;;  %v1760_v7 = vsub.f32 1.0, %v1759_v24 }
 0x598   :  { %v1709_v23 = vsel %vm1706_vm6, %v1708_v32, %v1704_v49  ;;  %v1774_v47 = vmul.f32 %v2199_v56, %v1669_v2 }
 0x599   :  { %v1773_v61 = vmul.f32 %v1709_v23, %v2758_v37  ;;  %v1761_v45 = vmul.f32 %v2197_v31, %v1760_v7  ;;  %v2056_v37 = vld [vmem:[%s2797_s8] ss:$0 sm:$0xff] }
 0x59b   :  { %v1775_v38 = vadd.f32 %v1774_v47, %v1773_v61  ;;  %v1762_v46 = vadd.f32 %v2197_v31, %v1761_v45 }
 0x59d   :  { %2200 = vtanh.f32 %v1775_v38  ;;  %v1766_v50 = vsel %vm1765_vm9, %v2197_v31, %v1762_v46 }
 0x59e   :  { %v1771_v10 = vsel %vm1768_vm10, %v1770_v57, %v1766_v50 }
 0x5a3   :  { %v2201_v35 = vpop.eup %2200 }
 0x5a4   :  { %v1777_v5 = vmul.f32 %v2201_v35, %v1771_v10 }
 0x5a6   :  { %2042 = vmatmul.msk.f32.vlgmr.msrb.gmra.mxu0 %vm52_vm1, %v1777_v5 }
 0x623   :  { %v1804_v11 = vpop.f32.mrf.mxu0 }
 0x624   :  { %v1831_v28 = vadd.f32 %v1830_v54, %v1804_v11 }
 0x626   :  { %v1837_v12 = vadd.f32 %v2056_v37, %v1831_v28 }
 0x628   :  { %vm1838_vm11 = vcmp.gt.f32.partialorder %v1837_v12, 0.0  ;;  %v1839_v17 = vmul.f32 0.01, %v1837_v12 }
 0x62a   :  { %v1840_v41 = vsel %vm1838_vm11, %v1837_v12, %v1839_v17 }
 0x62b   :  { %2045 = vmatmul.msk.f32.vlgmr.msrb.gmra.mxu2 %vm1846_vm12, %v1840_v41 }
 0x6ae   :  { %v1867_v19 = vpop.f32.mrf.mxu2 }
 0x6af   :  { %v1868_v58 = vadd.f32 %v2057_v16, %v1867_v19 }
 0x6b1   :  { %1870 = vst [vmem:[#allocation2] sm:$0xff] %v1868_v58 }
 0x6b2   :  { %1881 = dma.vmem_to_hbm [thread:$0]  %s1877_s9, 128, %s1879_s29, [#allocation3]  }
 0x6b3   :  { %2230 = dma.done.wait [#allocation3], 128  }
 0x6b4   :  { %2231 = vsyncadd [#allocation3], 4294967168 }
 0x6b5   :  { %1886 = vsyncpa [#allocation3], 1 }

</bundles_post_ra>
